<compile_context>
chip_gen: v7x
topology: tpu7x:2x2x1
jax: 0.10.0
libtpu: 0.0.40
codegen_flags: <defaults>
</compile_context>

<pallas_src>
import jax
import jax.numpy as jnp
import numpy as np
from jax import lax
from jax.experimental import pallas as pl
from jax.experimental.pallas import tpu as pltpu

# ---------------- small synthetic model dimensions ----------------
B, L = 2, 8            # batch, sequence length
SHDIM = 16             # LSTM hidden -> bi-LSTM annotation dim = 2*SHDIM
D = 2 * SHDIM          # 32 : annotation feature dim
V = 8                  # tgt_vocab_size (CRF tag set incl. START/STOP)
CTHDIM = 16            # classifier attention dim
CAHDIM = 16            # classifier activation dim
ETHDIM = 16            # extractor activation dim
NCLS = 2               # classifier output classes
K = 2                  # refinement iterations (args.k)
START_IDX, STOP_IDX = 0, 1
R = L * B              # rows of the time-major flattened layout, row = t*B + b


# =====================================================================
# Single fused kernel: refinement loop + classifier NLL + CRF loss
# =====================================================================
def classify_extractor_kernel(
        annot_ref, mask_ref, tgt_ref, prev_ref, tag_ref,
        seg_ref, seg_t_ref, tidx_ref,
        wm_a_ref, wm_e_ref, va_ref,
        wea_a_ref, we_last_ref, be_ref, wh_ref,
        wact_a_ref, wact_e_ref, bact_ref, wproj_ref,
        trans_ref, trans_t_ref,
        out_ref, kef_scratch):
    f32 = jnp.float32
    neg = jnp.float32(-1e30)

    def mm(a, b):
        # default MXU precision (global "highest" override removed per feedback)
        return jnp.dot(a, b, preferred_element_type=f32)

    annot = annot_ref[...]          # (R, D)   time-major flattened annotations
    mask_r = mask_ref[...]          # (R, 1)   1.0 = valid token
    seg = seg_ref[...]              # (R, B)   seg[i, b] = 1 iff row i is batch b
    seg_t = seg_t_ref[...]          # (B, R)
    trans = trans_ref[...]          # (V, V)   trans[next, prev]

    # ---- K-step refinement (self-attention + extractor tag features) --------
    # annotation projections are K-invariant -> hoisted out of the loop
    annot_map = mm(annot, wm_a_ref[...])                     # (R, CTHDIM)
    pre_a = mm(annot, wea_a_ref[...]) + be_ref[...]          # (R, ETHDIM)
    va = va_ref[...]                                          # (1, CTHDIM)
    we_last = we_last_ref[...]                                # (1, ETHDIM)
    wm_e = wm_e_ref[...]                                      # (V, CTHDIM)
    wh_t = wh_ref[...]                                        # (ETHDIM, V)

    efeats = jnp.zeros((R, V), f32)
    alpha_sum = jnp.zeros((R, 1), f32)
    wctx_e = jnp.zeros((R, V), f32)
    kef = jnp.zeros((R, V), f32)
    for k in range(K):
        # Self_Neural_Attention on cat([annotations, efeats], -1)
        mapped = annot_map if k == 0 else annot_map + mm(efeats, wm_e)
        act = jnp.tanh(mapped)
        e = jnp.sum(act * va, axis=-1, keepdims=True)          # (R, 1)
        e = jnp.where(mask_r > 0, e, neg)                      # masked_fill
        # softmax over time, per batch (segment mask instead of a reshape)
        m_b = jnp.max(jnp.where(seg > 0, e, neg), axis=0, keepdims=True)   # (1, B)
        m_rows = jnp.sum(seg * m_b, axis=-1, keepdims=True)                # (R, 1)
        p = jnp.exp(e - m_rows)                                            # masked -> 0
        d_b = jnp.sum(seg * p, axis=0, keepdims=True)                      # (1, B)
        d_rows = jnp.sum(seg * d_b, axis=-1, keepdims=True)                # (R, 1)
        alpha = p / d_rows                                                 # (R, 1)
        alpha_sum = alpha_sum + alpha
        if k > 0:                       # efeats == 0 on the first iteration
            wctx_e = wctx_e + alpha * efeats
        # Extractor.get_feature on cat([annotations, alpha], -1)
        new_ef = mm(jnp.tanh(pre_a + alpha * we_last), wh_t)               # (R, V)
        kef = kef + new_ef
        efeats = new_ef

    # summed contexts: kcontext = [sum_k ctx_annot | sum_k ctx_efeat]
    kctx_a = mm(seg_t, alpha_sum * annot)          # (B, D)
    kctx_e = mm(seg_t, wctx_e)                     # (B, V)

    # ---- classifier NLL loss -------------------------------------------------
    hid = jnp.tanh(mm(kctx_a, wact_a_ref[...]) + mm(kctx_e, wact_e_ref[...])
                   + bact_ref[...])                # (B, CAHDIM)
    logits = mm(hid, wproj_ref[...])               # (B, NCLS)
    lmax = jnp.max(logits, axis=-1, keepdims=True)
    lse = lmax + jnp.log(jnp.sum(jnp.exp(logits - lmax), axis=-1, keepdims=True))
    logp = logits - lse
    tag_oh = (tag_ref[...] ==
              lax.broadcasted_iota(jnp.int32, (B, NCLS), 1)).astype(f32)
    cla_loss = jnp.sum(-jnp.sum(logp * tag_oh, axis=-1, keepdims=True),
                       axis=0, keepdims=True) / B                        # (1, 1)

    # ---- CRF forward algorithm (log-partition), batched over B ---------------
    kef_scratch[...] = kef                         # per-timestep slices read below
    iota_v = lax.broadcasted_iota(jnp.int32, (1, V), 1)
    start_row = (iota_v == START_IDX).astype(f32)                      # (1, V)
    stop_row = trans_ref[STOP_IDX:STOP_IDX + 1, :]                     # (1, V) trans[STOP, :]
    etrans_t = jnp.exp(trans_t_ref[...])                               # exp(trans)[prev, next]

    fv = jnp.zeros((B, V), f32) + jnp.where(start_row > 0, 0.0, -10000.0)
    for t in range(L):
        feat_t = kef_scratch[t * B:(t + 1) * B, :]                     # (B, V)
        mask_t = mask_ref[t * B:(t + 1) * B, :]                        # (B, 1)
        m = jnp.max(fv, axis=-1, keepdims=True)                        # (B, 1)
        # new_fv[b,n] = feat[b,n] + m[b] + log(sum_c exp(fv[b,c]-m[b]) * exp(trans[n,c]))
        s = mm(jnp.exp(fv - m), etrans_t)                              # (B, V_next)
        new_fv = feat_t + m + jnp.log(s)
        fv = jnp.where(mask_t > 0, new_fv, fv)                         # masked carry
    terminal = fv + stop_row
    tmax = jnp.max(terminal, axis=-1, keepdims=True)
    fwd_b = tmax + jnp.log(jnp.sum(jnp.exp(terminal - tmax), axis=-1, keepdims=True))
    fwd_total = jnp.sum(fwd_b, axis=0, keepdims=True)                  # (1, 1)

    # ---- CRF gold-path score, vectorized over every (t, b) row ---------------
    iota_rv = lax.broadcasted_iota(jnp.int32, (R, V), 1)
    cur_oh = (tgt_ref[...] == iota_rv).astype(f32)                     # (R, V)
    prev_oh = (prev_ref[...] == iota_rv).astype(f32)                   # (R, V)
    trans_cur = mm(cur_oh, trans)                                      # (R, V) = trans[cur_i, :]
    t_sc = jnp.sum(trans_cur * prev_oh, axis=-1, keepdims=True)        # trans[cur, prev]
    e_sc = jnp.sum(kef * cur_oh, axis=-1, keepdims=True)               # emission at gold tag
    stop_sc = jnp.sum(cur_oh * stop_row, axis=-1, keepdims=True)       # trans[STOP, cur]
    len_b = jnp.sum(seg * mask_r, axis=0, keepdims=True)               # (1, B) lengths
    len_rows = jnp.sum(seg * len_b, axis=-1, keepdims=True)            # (R, 1)
    is_last = (tidx_ref[...] + 1.0 == len_rows).astype(f32)            # last valid step
    gold_rows = mask_r * (t_sc + e_sc) + is_last * stop_sc             # (R, 1)
    gold_total = jnp.sum(jnp.sum(seg * gold_rows, axis=0, keepdims=True),
                         axis=-1, keepdims=True)                       # (1, 1)
    # empty sequences take the START -> STOP transition as their gold path
    stop_start = jnp.sum(stop_row * start_row, axis=-1, keepdims=True)
    n_empty = jnp.sum(jnp.where(len_b == 0.0, 1.0, 0.0), axis=-1, keepdims=True)
    gold_total = gold_total + n_empty * stop_start

    ext_loss = (fwd_total - gold_total) / B
    out_ref[...] = 0.2 * cla_loss + 0.8 * ext_loss


# =====================================================================
# Wrapper: tiny layout prep + single pallas_call (no grid)
# =====================================================================
@jax.jit
def classify_extractor_forward(annotations, src_mask, tgt, tag, params):
    (wm, va, wact, bact, wproj, wea, be, wh, trans) = params
    f32 = jnp.float32

    # time-major flattened rows: row i = t * B + b
    annot_tm = jnp.transpose(annotations.astype(f32), (1, 0, 2)).reshape(R, D)
    mask_tm = src_mask.astype(f32).T.reshape(R, 1)
    tgt_i = tgt.astype(jnp.int32)
    tgt_tm = tgt_i.T.reshape(R, 1)
    prev_tm = jnp.concatenate(
        [jnp.full((1, B), START_IDX, jnp.int32), tgt_i.T[:L - 1, :]],
        axis=0).reshape(R, 1)
    tag_col = tag.astype(jnp.int32).reshape(B, 1)

    # compile-time constants (segment / time-index helpers) -> folded by XLA
    rows = np.arange(R)
    seg_np = (rows[:, None] % B == np.arange(B)[None, :]).astype(np.float32)
    seg = jnp.asarray(seg_np)                                   # (R, B)
    seg_t = jnp.asarray(seg_np.T)                               # (B, R)
    tidx = jnp.asarray((rows // B).astype(np.float32)[:, None])  # (R, 1)

    # parameter layout prep (nn.Linear stores [out, in])
    wm_a = wm[:, :D].T            # (D, CTHDIM)   attention.map_values (annotation part)
    wm_e = wm[:, D:].T            # (V, CTHDIM)   attention.map_values (efeats part)
    va_row = va                   # (1, CTHDIM)   attention.pre_alpha
    wea_a = wea[:, :D].T          # (D, ETHDIM)   extractor.activation (annotation part)
    we_last = wea[:, D:].T        # (1, ETHDIM)   extractor.activation (alpha column)
    be_row = be.reshape(1, ETHDIM)
    wh_t = wh.T                   # (ETHDIM, V)   extractor.hidden2tag
    wact_a = wact[:, :D].T        # (D, CAHDIM)   classifier.activation (annotation ctx)
    wact_e = wact[:, D:].T        # (V, CAHDIM)   classifier.activation (efeats ctx)
    bact_row = bact.reshape(1, CAHDIM)
    wproj_t = wproj.T             # (CAHDIM, NCLS)
    trans_t = trans.T             # (V, V)  trans[prev, next]

    loss = pl.pallas_call(
        classify_extractor_kernel,
        out_shape=jax.ShapeDtypeStruct((1, 1), f32),
        scratch_shapes=[pltpu.VMEM((R, V), f32)],
    )(annot_tm, mask_tm, tgt_tm, prev_tm, tag_col, seg, seg_t, tidx,
      wm_a, wm_e, va_row, wea_a, we_last, be_row, wh_t,
      wact_a, wact_e, bact_row, wproj_t, trans, trans_t)
    return loss[0, 0]


# =====================================================================
# Pure-JAX reference mirroring the PyTorch module (for verification)
# =====================================================================
def reference_forward(annotations, src_mask, tgt, tag, params):
    (wm, va, wact, bact, wproj, wea, be, wh, trans) = params
    mask = src_mask.astype(jnp.float32)
    efeats = jnp.zeros((B, L, V), jnp.float32)
    kcontext = kefeats = None
    for i in range(K):
        cla_annot = jnp.concatenate([annotations, efeats], axis=-1)
        e = jnp.squeeze(jnp.tanh(cla_annot @ wm.T) @ va.T, -1)
        e = jnp.where(mask == 0, -jnp.inf, e)
        alpha = jax.nn.softmax(e, axis=1)
        context = jnp.einsum("bl,bld->bd", alpha, cla_annot)
        ext_annot = jnp.concatenate([annotations, alpha[..., None]], axis=-1)
        new_efeats = jnp.tanh(ext_annot @ wea.T + be) @ wh.T
        efeats = new_efeats
        if i == 0:
            kcontext, kefeats = context, new_efeats
        else:
            kcontext, kefeats = kcontext + context, kefeats + new_efeats
    feats_c = jnp.tanh(kcontext @ wact.T + bact) @ wproj.T
    logp = jax.nn.log_softmax(feats_c, axis=-1)
    cla_loss = -jnp.mean(logp[jnp.arange(B), tag])
    feats_l = jnp.transpose(kefeats, (1, 0, 2))
    mask_l = mask.T
    fv = jnp.full((B, V), -10000.0).at[:, START_IDX].set(0.0)
    for t in range(L):
        scores = fv[:, None, :] + trans[None, :, :] + feats_l[t][:, :, None]
        lse = jax.scipy.special.logsumexp(scores, axis=-1)
        fv = jnp.where(mask_l[t][:, None] > 0, lse, fv)
    fwd = jax.scipy.special.logsumexp(fv + trans[STOP_IDX][None, :], axis=-1)
    tags_ext = jnp.concatenate(
        [jnp.full((B, 1), START_IDX, jnp.int32), tgt.astype(jnp.int32)], axis=1)
    score = jnp.zeros((B,), jnp.float32)
    for t in range(L):
        cur, prev = tags_ext[:, t + 1], tags_ext[:, t]
        inc = trans[cur, prev] + feats_l[t][jnp.arange(B), cur]
        score = score + jnp.where(mask_l[t] > 0, inc, 0.0)
    lengths = mask_l.sum(axis=0).astype(jnp.int32)
    score = score + trans[STOP_IDX, tags_ext[jnp.arange(B), lengths]]
    ext_loss = jnp.sum(fwd - score) / B
    return 0.2 * cla_loss + 0.8 * ext_loss


if __name__ == "__main__":
    key = jax.random.PRNGKey(0)
    ks = jax.random.split(key, 12)
    scale = 0.1
    wm = jax.random.normal(ks[0], (CTHDIM, D + V), jnp.float32) * scale     # attention.map_values.weight
    va = jax.random.normal(ks[1], (1, CTHDIM), jnp.float32) * scale         # attention.pre_alpha.weight
    wact = jax.random.normal(ks[2], (CAHDIM, D + V), jnp.float32) * scale   # classifier.activation.weight
    bact = jax.random.normal(ks[3], (CAHDIM,), jnp.float32) * scale
    wproj = jax.random.normal(ks[4], (NCLS, CAHDIM), jnp.float32) * scale   # classifier.proj.weight
    wea = jax.random.normal(ks[5], (ETHDIM, D + 1), jnp.float32) * scale    # extractor.activation.weight
    be = jax.random.normal(ks[6], (ETHDIM,), jnp.float32) * scale
    wh = jax.random.normal(ks[7], (V, ETHDIM), jnp.float32) * scale         # extractor.hidden2tag.weight
    trans = jax.random.normal(ks[8], (V, V), jnp.float32)                   # extractor.transitions
    trans = trans.at[START_IDX, :].set(-1000.0)
    trans = trans.at[:, STOP_IDX].set(-1000.0)
    # TODO(synk): the tag-pair-specific constraints of constrain_transition() need a concrete
    # tgt_field vocab ('ts','vs',...); only the START/STOP constraints are applied here.
    params = (wm, va, wact, bact, wproj, wea, be, wh, trans)

    # `annotations` stands in for bert_encoding(src, src_mask) (BERT + bi-LSTM are external);
    # dropout is identity (eval mode).
    annotations = jax.random.normal(ks[9], (B, L, D), jnp.float32)
    lengths = jnp.array([L, 5], jnp.int32)
    src_mask = (jnp.arange(L)[None, :] < lengths[:, None]).astype(jnp.float32)   # (B, L)
    tgt = jax.random.randint(ks[10], (B, L), 2, V)                               # CRF gold tags
    tag = jnp.array([1, 0], jnp.int32)                                           # classifier labels

    loss = classify_extractor_forward(annotations, src_mask, tgt, tag, params)
    loss = jax.block_until_ready(loss)

    ref = reference_forward(annotations, src_mask, tgt, tag, params)
    # Default (non-"highest") MXU matmul precision is used in both kernel and
    # reference per the perf feedback, so allow bf16-input-level differences.
    np.testing.assert_allclose(np.asarray(loss), np.asarray(ref), rtol=2e-2, atol=2e-2)
    print("KERNEL_OK")
</pallas_src>

<mosaic_0001>
module attributes {stable_mosaic.version = 11 : i64} {
  func.func @classify_extractor_kernel(%arg0: memref<16x32xf32, #tpu.memory_space<vmem>>, %arg1: memref<16x1xf32, #tpu.memory_space<vmem>>, %arg2: memref<16x1xi32, #tpu.memory_space<vmem>>, %arg3: memref<16x1xi32, #tpu.memory_space<vmem>>, %arg4: memref<2x1xi32, #tpu.memory_space<vmem>>, %arg5: memref<16x2xf32, #tpu.memory_space<vmem>>, %arg6: memref<2x16xf32, #tpu.memory_space<vmem>>, %arg7: memref<16x1xf32, #tpu.memory_space<vmem>>, %arg8: memref<32x16xf32, #tpu.memory_space<vmem>>, %arg9: memref<8x16xf32, #tpu.memory_space<vmem>>, %arg10: memref<1x16xf32, #tpu.memory_space<vmem>>, %arg11: memref<32x16xf32, #tpu.memory_space<vmem>>, %arg12: memref<1x16xf32, #tpu.memory_space<vmem>>, %arg13: memref<1x16xf32, #tpu.memory_space<vmem>>, %arg14: memref<16x8xf32, #tpu.memory_space<vmem>>, %arg15: memref<32x16xf32, #tpu.memory_space<vmem>>, %arg16: memref<8x16xf32, #tpu.memory_space<vmem>>, %arg17: memref<1x16xf32, #tpu.memory_space<vmem>>, %arg18: memref<16x2xf32, #tpu.memory_space<vmem>>, %arg19: memref<8x8xf32, #tpu.memory_space<vmem>>, %arg20: memref<8x8xf32, #tpu.memory_space<vmem>>, %arg21: memref<1x1xf32, #tpu.memory_space<vmem>>, %arg22: memref<16x8xf32, #tpu.memory_space<vmem>>) attributes {dimension_semantics = [], scalar_prefetch = 0 : i64, scratch_operands = 1 : i64, tpu.core_type = #tpu.core_type<tc>} {
    %c0 = arith.constant 0 : index
    %c0_0 = arith.constant 0 : index
    %0 = vector.load %arg0[%c0, %c0_0] : memref<16x32xf32, #tpu.memory_space<vmem>>, vector<16x32xf32>
    %c0_1 = arith.constant 0 : index
    %c0_2 = arith.constant 0 : index
    %1 = vector.load %arg1[%c0_1, %c0_2] : memref<16x1xf32, #tpu.memory_space<vmem>>, vector<16x1xf32>
    %c0_3 = arith.constant 0 : index
    %c0_4 = arith.constant 0 : index
    %2 = vector.load %arg5[%c0_3, %c0_4] : memref<16x2xf32, #tpu.memory_space<vmem>>, vector<16x2xf32>
    %c0_5 = arith.constant 0 : index
    %c0_6 = arith.constant 0 : index
    %3 = vector.load %arg6[%c0_5, %c0_6] : memref<2x16xf32, #tpu.memory_space<vmem>>, vector<2x16xf32>
    %c0_7 = arith.constant 0 : index
    %c0_8 = arith.constant 0 : index
    %4 = vector.load %arg19[%c0_7, %c0_8] : memref<8x8xf32, #tpu.memory_space<vmem>>, vector<8x8xf32>
    %c0_9 = arith.constant 0 : index
    %c0_10 = arith.constant 0 : index
    %5 = vector.load %arg8[%c0_9, %c0_10] : memref<32x16xf32, #tpu.memory_space<vmem>>, vector<32x16xf32>
    %cst = arith.constant dense<0.000000e+00> : vector<16x16xf32>
    %6 = tpu.matmul %0, %5, %cst {dimension_numbers = #tpu.dot_dimension_numbers<[1], [0], [0], [1], [0, 0, 1, 1], [], []>} : vector<16x32xf32>, vector<32x16xf32>, vector<16x16xf32> -> vector<16x16xf32>
    %c0_11 = arith.constant 0 : index
    %c0_12 = arith.constant 0 : index
    %7 = vector.load %arg11[%c0_11, %c0_12] : memref<32x16xf32, #tpu.memory_space<vmem>>, vector<32x16xf32>
    %cst_13 = arith.constant dense<0.000000e+00> : vector<16x16xf32>
    %8 = tpu.matmul %0, %7, %cst_13 {dimension_numbers = #tpu.dot_dimension_numbers<[1], [0], [0], [1], [0, 0, 1, 1], [], []>} : vector<16x32xf32>, vector<32x16xf32>, vector<16x16xf32> -> vector<16x16xf32>
    %c0_14 = arith.constant 0 : index
    %c0_15 = arith.constant 0 : index
    %9 = vector.load %arg13[%c0_14, %c0_15] : memref<1x16xf32, #tpu.memory_space<vmem>>, vector<1x16xf32>
    %10 = vector.broadcast %9 : vector<1x16xf32> to vector<16x16xf32>
    %11 = arith.addf %8, %10 : vector<16x16xf32>
    %c0_16 = arith.constant 0 : index
    %c0_17 = arith.constant 0 : index
    %12 = vector.load %arg10[%c0_16, %c0_17] : memref<1x16xf32, #tpu.memory_space<vmem>>, vector<1x16xf32>
    %c0_18 = arith.constant 0 : index
    %c0_19 = arith.constant 0 : index
    %13 = vector.load %arg12[%c0_18, %c0_19] : memref<1x16xf32, #tpu.memory_space<vmem>>, vector<1x16xf32>
    %c0_20 = arith.constant 0 : index
    %c0_21 = arith.constant 0 : index
    %14 = vector.load %arg9[%c0_20, %c0_21] : memref<8x16xf32, #tpu.memory_space<vmem>>, vector<8x16xf32>
    %c0_22 = arith.constant 0 : index
    %c0_23 = arith.constant 0 : index
    %15 = vector.load %arg14[%c0_22, %c0_23] : memref<16x8xf32, #tpu.memory_space<vmem>>, vector<16x8xf32>
    %cst_24 = arith.constant 0.000000e+00 : f32
    %16 = vector.broadcast %cst_24 : f32 to vector<16x1xf32>
    %cst_25 = arith.constant 0.000000e+00 : f32
    %17 = vector.broadcast %cst_25 : f32 to vector<16x8xf32>
    %cst_26 = arith.constant 0.000000e+00 : f32
    %18 = vector.broadcast %cst_26 : f32 to vector<16x8xf32>
    %19 = math.tanh %6 : vector<16x16xf32>
    %20 = vector.broadcast %12 : vector<1x16xf32> to vector<16x16xf32>
    %21 = arith.mulf %19, %20 : vector<16x16xf32>
    %cst_27 = arith.constant dense<0.000000e+00> : vector<16xf32>
    %22 = vector.multi_reduction <add>, %21, %cst_27 [1] : vector<16x16xf32> to vector<16xf32>
    %23 = vector.shape_cast %22 : vector<16xf32> to vector<16x1xf32>
    %cst_28 = arith.constant 0.000000e+00 : f32
    %24 = vector.broadcast %cst_28 : f32 to vector<16x1xf32>
    %25 = arith.cmpf ogt, %1, %24 : vector<16x1xf32>
    %cst_29 = arith.constant -1.000000e+30 : f32
    %26 = vector.broadcast %cst_29 : f32 to vector<16x1xf32>
    %27 = arith.select %25, %23, %26 : vector<16x1xi1>, vector<16x1xf32>
    %cst_30 = arith.constant 0.000000e+00 : f32
    %28 = vector.broadcast %cst_30 : f32 to vector<16x2xf32>
    %29 = arith.cmpf ogt, %2, %28 : vector<16x2xf32>
    %cst_31 = arith.constant -1.000000e+30 : f32
    %30 = vector.shape_cast %27 : vector<16x1xf32> to vector<16x1xf32>
    %31 = vector.broadcast %30 : vector<16x1xf32> to vector<16x2xf32>
    %32 = vector.broadcast %cst_31 : f32 to vector<16x2xf32>
    %33 = arith.select %29, %31, %32 : vector<16x2xi1>, vector<16x2xf32>
    %cst_32 = arith.constant dense<0xFF800000> : vector<2xf32>
    %34 = vector.multi_reduction <maximumf>, %33, %cst_32 [0] : vector<16x2xf32> to vector<2xf32>
    %35 = vector.shape_cast %34 : vector<2xf32> to vector<1x2xf32>
    %36 = vector.broadcast %35 : vector<1x2xf32> to vector<16x2xf32>
    %37 = arith.mulf %2, %36 : vector<16x2xf32>
    %cst_33 = arith.constant dense<0.000000e+00> : vector<16xf32>
    %38 = vector.multi_reduction <add>, %37, %cst_33 [1] : vector<16x2xf32> to vector<16xf32>
    %39 = vector.shape_cast %38 : vector<16xf32> to vector<16x1xf32>
    %40 = arith.subf %27, %39 : vector<16x1xf32>
    %41 = math.exp %40 : vector<16x1xf32>
    %42 = vector.broadcast %41 : vector<16x1xf32> to vector<16x2xf32>
    %43 = arith.mulf %2, %42 : vector<16x2xf32>
    %cst_34 = arith.constant dense<0.000000e+00> : vector<2xf32>
    %44 = vector.multi_reduction <add>, %43, %cst_34 [0] : vector<16x2xf32> to vector<2xf32>
    %45 = vector.shape_cast %44 : vector<2xf32> to vector<1x2xf32>
    %46 = vector.broadcast %45 : vector<1x2xf32> to vector<16x2xf32>
    %47 = arith.mulf %2, %46 : vector<16x2xf32>
    %cst_35 = arith.constant dense<0.000000e+00> : vector<16xf32>
    %48 = vector.multi_reduction <add>, %47, %cst_35 [1] : vector<16x2xf32> to vector<16xf32>
    %49 = vector.shape_cast %48 : vector<16xf32> to vector<16x1xf32>
    %50 = arith.divf %41, %49 : vector<16x1xf32>
    %51 = arith.addf %16, %50 : vector<16x1xf32>
    %52 = vector.broadcast %50 : vector<16x1xf32> to vector<16x16xf32>
    %53 = vector.broadcast %13 : vector<1x16xf32> to vector<16x16xf32>
    %54 = arith.mulf %52, %53 : vector<16x16xf32>
    %55 = arith.addf %11, %54 : vector<16x16xf32>
    %56 = math.tanh %55 : vector<16x16xf32>
    %cst_36 = arith.constant dense<0.000000e+00> : vector<16x8xf32>
    %57 = tpu.matmul %56, %15, %cst_36 {dimension_numbers = #tpu.dot_dimension_numbers<[1], [0], [0], [1], [0, 0, 1, 1], [], []>} : vector<16x16xf32>, vector<16x8xf32>, vector<16x8xf32> -> vector<16x8xf32>
    %58 = arith.addf %18, %57 : vector<16x8xf32>
    %cst_37 = arith.constant dense<0.000000e+00> : vector<16x16xf32>
    %59 = tpu.matmul %57, %14, %cst_37 {dimension_numbers = #tpu.dot_dimension_numbers<[1], [0], [0], [1], [0, 0, 1, 1], [], []>} : vector<16x8xf32>, vector<8x16xf32>, vector<16x16xf32> -> vector<16x16xf32>
    %60 = arith.addf %6, %59 : vector<16x16xf32>
    %61 = math.tanh %60 : vector<16x16xf32>
    %62 = vector.broadcast %12 : vector<1x16xf32> to vector<16x16xf32>
    %63 = arith.mulf %61, %62 : vector<16x16xf32>
    %cst_38 = arith.constant dense<0.000000e+00> : vector<16xf32>
    %64 = vector.multi_reduction <add>, %63, %cst_38 [1] : vector<16x16xf32> to vector<16xf32>
    %65 = vector.shape_cast %64 : vector<16xf32> to vector<16x1xf32>
    %cst_39 = arith.constant 0.000000e+00 : f32
    %66 = vector.broadcast %cst_39 : f32 to vector<16x1xf32>
    %67 = arith.cmpf ogt, %1, %66 : vector<16x1xf32>
    %cst_40 = arith.constant -1.000000e+30 : f32
    %68 = vector.broadcast %cst_40 : f32 to vector<16x1xf32>
    %69 = arith.select %67, %65, %68 : vector<16x1xi1>, vector<16x1xf32>
    %cst_41 = arith.constant 0.000000e+00 : f32
    %70 = vector.broadcast %cst_41 : f32 to vector<16x2xf32>
    %71 = arith.cmpf ogt, %2, %70 : vector<16x2xf32>
    %cst_42 = arith.constant -1.000000e+30 : f32
    %72 = vector.shape_cast %69 : vector<16x1xf32> to vector<16x1xf32>
    %73 = vector.broadcast %72 : vector<16x1xf32> to vector<16x2xf32>
    %74 = vector.broadcast %cst_42 : f32 to vector<16x2xf32>
    %75 = arith.select %71, %73, %74 : vector<16x2xi1>, vector<16x2xf32>
    %cst_43 = arith.constant dense<0xFF800000> : vector<2xf32>
    %76 = vector.multi_reduction <maximumf>, %75, %cst_43 [0] : vector<16x2xf32> to vector<2xf32>
    %77 = vector.shape_cast %76 : vector<2xf32> to vector<1x2xf32>
    %78 = vector.broadcast %77 : vector<1x2xf32> to vector<16x2xf32>
    %79 = arith.mulf %2, %78 : vector<16x2xf32>
    %cst_44 = arith.constant dense<0.000000e+00> : vector<16xf32>
    %80 = vector.multi_reduction <add>, %79, %cst_44 [1] : vector<16x2xf32> to vector<16xf32>
    %81 = vector.shape_cast %80 : vector<16xf32> to vector<16x1xf32>
    %82 = arith.subf %69, %81 : vector<16x1xf32>
    %83 = math.exp %82 : vector<16x1xf32>
    %84 = vector.broadcast %83 : vector<16x1xf32> to vector<16x2xf32>
    %85 = arith.mulf %2, %84 : vector<16x2xf32>
    %cst_45 = arith.constant dense<0.000000e+00> : vector<2xf32>
    %86 = vector.multi_reduction <add>, %85, %cst_45 [0] : vector<16x2xf32> to vector<2xf32>
    %87 = vector.shape_cast %86 : vector<2xf32> to vector<1x2xf32>
    %88 = vector.broadcast %87 : vector<1x2xf32> to vector<16x2xf32>
    %89 = arith.mulf %2, %88 : vector<16x2xf32>
    %cst_46 = arith.constant dense<0.000000e+00> : vector<16xf32>
    %90 = vector.multi_reduction <add>, %89, %cst_46 [1] : vector<16x2xf32> to vector<16xf32>
    %91 = vector.shape_cast %90 : vector<16xf32> to vector<16x1xf32>
    %92 = arith.divf %83, %91 : vector<16x1xf32>
    %93 = arith.addf %51, %92 : vector<16x1xf32>
    %94 = vector.broadcast %92 : vector<16x1xf32> to vector<16x8xf32>
    %95 = arith.mulf %94, %57 : vector<16x8xf32>
    %96 = arith.addf %17, %95 : vector<16x8xf32>
    %97 = vector.broadcast %92 : vector<16x1xf32> to vector<16x16xf32>
    %98 = vector.broadcast %13 : vector<1x16xf32> to vector<16x16xf32>
    %99 = arith.mulf %97, %98 : vector<16x16xf32>
    %100 = arith.addf %11, %99 : vector<16x16xf32>
    %101 = math.tanh %100 : vector<16x16xf32>
    %cst_47 = arith.constant dense<0.000000e+00> : vector<16x8xf32>
    %102 = tpu.matmul %101, %15, %cst_47 {dimension_numbers = #tpu.dot_dimension_numbers<[1], [0], [0], [1], [0, 0, 1, 1], [], []>} : vector<16x16xf32>, vector<16x8xf32>, vector<16x8xf32> -> vector<16x8xf32>
    %103 = arith.addf %58, %102 : vector<16x8xf32>
    %104 = vector.broadcast %93 : vector<16x1xf32> to vector<16x32xf32>
    %105 = arith.mulf %104, %0 : vector<16x32xf32>
    %cst_48 = arith.constant dense<0.000000e+00> : vector<2x32xf32>
    %106 = tpu.matmul %3, %105, %cst_48 {dimension_numbers = #tpu.dot_dimension_numbers<[1], [0], [0], [1], [0, 0, 1, 1], [], []>} : vector<2x16xf32>, vector<16x32xf32>, vector<2x32xf32> -> vector<2x32xf32>
    %cst_49 = arith.constant dense<0.000000e+00> : vector<2x8xf32>
    %107 = tpu.matmul %3, %96, %cst_49 {dimension_numbers = #tpu.dot_dimension_numbers<[1], [0], [0], [1], [0, 0, 1, 1], [], []>} : vector<2x16xf32>, vector<16x8xf32>, vector<2x8xf32> -> vector<2x8xf32>
    %c0_50 = arith.constant 0 : index
    %c0_51 = arith.constant 0 : index
    %108 = vector.load %arg15[%c0_50, %c0_51] : memref<32x16xf32, #tpu.memory_space<vmem>>, vector<32x16xf32>
    %cst_52 = arith.constant dense<0.000000e+00> : vector<2x16xf32>
    %109 = tpu.matmul %106, %108, %cst_52 {dimension_numbers = #tpu.dot_dimension_numbers<[1], [0], [0], [1], [0, 0, 1, 1], [], []>} : vector<2x32xf32>, vector<32x16xf32>, vector<2x16xf32> -> vector<2x16xf32>
    %c0_53 = arith.constant 0 : index
    %c0_54 = arith.constant 0 : index
    %110 = vector.load %arg16[%c0_53, %c0_54] : memref<8x16xf32, #tpu.memory_space<vmem>>, vector<8x16xf32>
    %cst_55 = arith.constant dense<0.000000e+00> : vector<2x16xf32>
    %111 = tpu.matmul %107, %110, %cst_55 {dimension_numbers = #tpu.dot_dimension_numbers<[1], [0], [0], [1], [0, 0, 1, 1], [], []>} : vector<2x8xf32>, vector<8x16xf32>, vector<2x16xf32> -> vector<2x16xf32>
    %112 = arith.addf %109, %111 : vector<2x16xf32>
    %c0_56 = arith.constant 0 : index
    %c0_57 = arith.constant 0 : index
    %113 = vector.load %arg17[%c0_56, %c0_57] : memref<1x16xf32, #tpu.memory_space<vmem>>, vector<1x16xf32>
    %114 = vector.broadcast %113 : vector<1x16xf32> to vector<2x16xf32>
    %115 = arith.addf %112, %114 : vector<2x16xf32>
    %116 = math.tanh %115 : vector<2x16xf32>
    %c0_58 = arith.constant 0 : index
    %c0_59 = arith.constant 0 : index
    %117 = vector.load %arg18[%c0_58, %c0_59] : memref<16x2xf32, #tpu.memory_space<vmem>>, vector<16x2xf32>
    %cst_60 = arith.constant dense<0.000000e+00> : vector<2x2xf32>
    %118 = tpu.matmul %116, %117, %cst_60 {dimension_numbers = #tpu.dot_dimension_numbers<[1], [0], [0], [1], [0, 0, 1, 1], [], []>} : vector<2x16xf32>, vector<16x2xf32>, vector<2x2xf32> -> vector<2x2xf32>
    %cst_61 = arith.constant dense<0xFF800000> : vector<2xf32>
    %119 = vector.multi_reduction <maximumf>, %118, %cst_61 [1] : vector<2x2xf32> to vector<2xf32>
    %120 = vector.shape_cast %119 : vector<2xf32> to vector<2x1xf32>
    %121 = vector.broadcast %120 : vector<2x1xf32> to vector<2x2xf32>
    %122 = arith.subf %118, %121 : vector<2x2xf32>
    %123 = math.exp %122 : vector<2x2xf32>
    %cst_62 = arith.constant dense<0.000000e+00> : vector<2xf32>
    %124 = vector.multi_reduction <add>, %123, %cst_62 [1] : vector<2x2xf32> to vector<2xf32>
    %125 = vector.shape_cast %124 : vector<2xf32> to vector<2x1xf32>
    %126 = math.log %125 : vector<2x1xf32>
    %127 = arith.addf %120, %126 : vector<2x1xf32>
    %128 = vector.broadcast %127 : vector<2x1xf32> to vector<2x2xf32>
    %129 = arith.subf %118, %128 : vector<2x2xf32>
    %c0_63 = arith.constant 0 : index
    %c0_64 = arith.constant 0 : index
    %130 = vector.load %arg4[%c0_63, %c0_64] : memref<2x1xi32, #tpu.memory_space<vmem>>, vector<2x1xi32>
    %131 = tpu.iota {dimensions = array<i32: 1>} : vector<2x2xi32>
    %132 = vector.broadcast %130 : vector<2x1xi32> to vector<2x2xi32>
    %133 = arith.cmpi eq, %132, %131 : vector<2x2xi32>
    %134 = arith.extui %133 : vector<2x2xi1> to vector<2x2xi32>
    %135 = arith.sitofp %134 : vector<2x2xi32> to vector<2x2xf32>
    %136 = arith.mulf %129, %135 : vector<2x2xf32>
    %cst_65 = arith.constant dense<0.000000e+00> : vector<2xf32>
    %137 = vector.multi_reduction <add>, %136, %cst_65 [1] : vector<2x2xf32> to vector<2xf32>
    %138 = vector.shape_cast %137 : vector<2xf32> to vector<2x1xf32>
    %cst_66 = arith.constant 0.000000e+00 : f32
    %139 = vector.broadcast %cst_66 : f32 to vector<2x1xf32>
    %140 = arith.subf %139, %138 : vector<2x1xf32>
    %cst_67 = arith.constant dense<0.000000e+00> : vector<1xf32>
    %141 = vector.multi_reduction <add>, %140, %cst_67 [0] : vector<2x1xf32> to vector<1xf32>
    %142 = vector.shape_cast %141 : vector<1xf32> to vector<1x1xf32>
    %cst_68 = arith.constant 2.000000e+00 : f32
    %143 = vector.broadcast %cst_68 : f32 to vector<1x1xf32>
    %144 = arith.divf %142, %143 : vector<1x1xf32>
    %c0_69 = arith.constant 0 : index
    %c0_70 = arith.constant 0 : index
    %145 = vector.load %arg22[%c0_69, %c0_70] : memref<16x8xf32, #tpu.memory_space<vmem>>, vector<16x8xf32>
    tpu.vector_store %arg22[%c0_69, %c0_70], %103 {strides = array<i32>} : memref<16x8xf32, #tpu.memory_space<vmem>>, vector<16x8xf32>,
    %146 = tpu.iota {dimensions = array<i32: 1>} : vector<1x8xi32>
    %c0_i32 = arith.constant 0 : i32
    %147 = vector.broadcast %c0_i32 : i32 to vector<1x8xi32>
    %148 = arith.cmpi eq, %146, %147 : vector<1x8xi32>
    %149 = arith.extui %148 : vector<1x8xi1> to vector<1x8xi32>
    %150 = arith.sitofp %149 : vector<1x8xi32> to vector<1x8xf32>
    %c1 = arith.constant 1 : index
    %c0_71 = arith.constant 0 : index
    %151 = vector.load %arg19[%c1, %c0_71] : memref<8x8xf32, #tpu.memory_space<vmem>>, vector<1x8xf32>
    %c0_72 = arith.constant 0 : index
    %c0_73 = arith.constant 0 : index
    %152 = vector.load %arg20[%c0_72, %c0_73] : memref<8x8xf32, #tpu.memory_space<vmem>>, vector<8x8xf32>
    %153 = math.exp %152 : vector<8x8xf32>
    %cst_74 = arith.constant 0.000000e+00 : f32
    %154 = vector.broadcast %cst_74 : f32 to vector<2x8xf32>
    %cst_75 = arith.constant 0.000000e+00 : f32
    %155 = vector.broadcast %cst_75 : f32 to vector<1x8xf32>
    %156 = arith.cmpf ogt, %150, %155 : vector<1x8xf32>
    %cst_76 = arith.constant 0.000000e+00 : f32
    %cst_77 = arith.constant -1.000000e+04 : f32
    %157 = vector.broadcast %cst_76 : f32 to vector<1x8xf32>
    %158 = vector.broadcast %cst_77 : f32 to vector<1x8xf32>
    %159 = arith.select %156, %157, %158 : vector<1x8xi1>, vector<1x8xf32>
    %160 = vector.broadcast %159 : vector<1x8xf32> to vector<2x8xf32>
    %161 = arith.addf %154, %160 : vector<2x8xf32>
    %c0_78 = arith.constant 0 : index
    %c0_79 = arith.constant 0 : index
    %162 = vector.load %arg22[%c0_78, %c0_79] : memref<16x8xf32, #tpu.memory_space<vmem>>, vector<2x8xf32>
    %c0_80 = arith.constant 0 : index
    %c0_81 = arith.constant 0 : index
    %163 = vector.load %arg1[%c0_80, %c0_81] : memref<16x1xf32, #tpu.memory_space<vmem>>, vector<2x1xf32>
    %cst_82 = arith.constant dense<0xFF800000> : vector<2xf32>
    %164 = vector.multi_reduction <maximumf>, %161, %cst_82 [1] : vector<2x8xf32> to vector<2xf32>
    %165 = vector.shape_cast %164 : vector<2xf32> to vector<2x1xf32>
    %166 = vector.broadcast %165 : vector<2x1xf32> to vector<2x8xf32>
    %167 = arith.subf %161, %166 : vector<2x8xf32>
    %168 = math.exp %167 : vector<2x8xf32>
    %cst_83 = arith.constant dense<0.000000e+00> : vector<2x8xf32>
    %169 = tpu.matmul %168, %153, %cst_83 {dimension_numbers = #tpu.dot_dimension_numbers<[1], [0], [0], [1], [0, 0, 1, 1], [], []>} : vector<2x8xf32>, vector<8x8xf32>, vector<2x8xf32> -> vector<2x8xf32>
    %170 = vector.broadcast %165 : vector<2x1xf32> to vector<2x8xf32>
    %171 = arith.addf %162, %170 : vector<2x8xf32>
    %172 = math.log %169 : vector<2x8xf32>
    %173 = arith.addf %171, %172 : vector<2x8xf32>
    %cst_84 = arith.constant 0.000000e+00 : f32
    %174 = vector.broadcast %cst_84 : f32 to vector<2x1xf32>
    %175 = arith.cmpf ogt, %163, %174 : vector<2x1xf32>
    %176 = vector.shape_cast %175 : vector<2x1xi1> to vector<2x1xi1>
    %177 = vector.broadcast %176 : vector<2x1xi1> to vector<2x8xi1>
    %178 = arith.select %177, %173, %161 : vector<2x8xi1>, vector<2x8xf32>
    %c2 = arith.constant 2 : index
    %c0_85 = arith.constant 0 : index
    %179 = vector.load %arg22[%c2, %c0_85] : memref<16x8xf32, #tpu.memory_space<vmem>>, vector<2x8xf32>
    %c2_86 = arith.constant 2 : index
    %c0_87 = arith.constant 0 : index
    %180 = vector.load %arg1[%c2_86, %c0_87] : memref<16x1xf32, #tpu.memory_space<vmem>>, vector<2x1xf32>
    %cst_88 = arith.constant dense<0xFF800000> : vector<2xf32>
    %181 = vector.multi_reduction <maximumf>, %178, %cst_88 [1] : vector<2x8xf32> to vector<2xf32>
    %182 = vector.shape_cast %181 : vector<2xf32> to vector<2x1xf32>
    %183 = vector.broadcast %182 : vector<2x1xf32> to vector<2x8xf32>
    %184 = arith.subf %178, %183 : vector<2x8xf32>
    %185 = math.exp %184 : vector<2x8xf32>
    %cst_89 = arith.constant dense<0.000000e+00> : vector<2x8xf32>
    %186 = tpu.matmul %185, %153, %cst_89 {dimension_numbers = #tpu.dot_dimension_numbers<[1], [0], [0], [1], [0, 0, 1, 1], [], []>} : vector<2x8xf32>, vector<8x8xf32>, vector<2x8xf32> -> vector<2x8xf32>
    %187 = vector.broadcast %182 : vector<2x1xf32> to vector<2x8xf32>
    %188 = arith.addf %179, %187 : vector<2x8xf32>
    %189 = math.log %186 : vector<2x8xf32>
    %190 = arith.addf %188, %189 : vector<2x8xf32>
    %cst_90 = arith.constant 0.000000e+00 : f32
    %191 = vector.broadcast %cst_90 : f32 to vector<2x1xf32>
    %192 = arith.cmpf ogt, %180, %191 : vector<2x1xf32>
    %193 = vector.shape_cast %192 : vector<2x1xi1> to vector<2x1xi1>
    %194 = vector.broadcast %193 : vector<2x1xi1> to vector<2x8xi1>
    %195 = arith.select %194, %190, %178 : vector<2x8xi1>, vector<2x8xf32>
    %c4 = arith.constant 4 : index
    %c0_91 = arith.constant 0 : index
    %196 = vector.load %arg22[%c4, %c0_91] : memref<16x8xf32, #tpu.memory_space<vmem>>, vector<2x8xf32>
    %c4_92 = arith.constant 4 : index
    %c0_93 = arith.constant 0 : index
    %197 = vector.load %arg1[%c4_92, %c0_93] : memref<16x1xf32, #tpu.memory_space<vmem>>, vector<2x1xf32>
    %cst_94 = arith.constant dense<0xFF800000> : vector<2xf32>
    %198 = vector.multi_reduction <maximumf>, %195, %cst_94 [1] : vector<2x8xf32> to vector<2xf32>
    %199 = vector.shape_cast %198 : vector<2xf32> to vector<2x1xf32>
    %200 = vector.broadcast %199 : vector<2x1xf32> to vector<2x8xf32>
    %201 = arith.subf %195, %200 : vector<2x8xf32>
    %202 = math.exp %201 : vector<2x8xf32>
    %cst_95 = arith.constant dense<0.000000e+00> : vector<2x8xf32>
    %203 = tpu.matmul %202, %153, %cst_95 {dimension_numbers = #tpu.dot_dimension_numbers<[1], [0], [0], [1], [0, 0, 1, 1], [], []>} : vector<2x8xf32>, vector<8x8xf32>, vector<2x8xf32> -> vector<2x8xf32>
    %204 = vector.broadcast %199 : vector<2x1xf32> to vector<2x8xf32>
    %205 = arith.addf %196, %204 : vector<2x8xf32>
    %206 = math.log %203 : vector<2x8xf32>
    %207 = arith.addf %205, %206 : vector<2x8xf32>
    %cst_96 = arith.constant 0.000000e+00 : f32
    %208 = vector.broadcast %cst_96 : f32 to vector<2x1xf32>
    %209 = arith.cmpf ogt, %197, %208 : vector<2x1xf32>
    %210 = vector.shape_cast %209 : vector<2x1xi1> to vector<2x1xi1>
    %211 = vector.broadcast %210 : vector<2x1xi1> to vector<2x8xi1>
    %212 = arith.select %211, %207, %195 : vector<2x8xi1>, vector<2x8xf32>
    %c6 = arith.constant 6 : index
    %c0_97 = arith.constant 0 : index
    %213 = vector.load %arg22[%c6, %c0_97] : memref<16x8xf32, #tpu.memory_space<vmem>>, vector<2x8xf32>
    %c6_98 = arith.constant 6 : index
    %c0_99 = arith.constant 0 : index
    %214 = vector.load %arg1[%c6_98, %c0_99] : memref<16x1xf32, #tpu.memory_space<vmem>>, vector<2x1xf32>
    %cst_100 = arith.constant dense<0xFF800000> : vector<2xf32>
    %215 = vector.multi_reduction <maximumf>, %212, %cst_100 [1] : vector<2x8xf32> to vector<2xf32>
    %216 = vector.shape_cast %215 : vector<2xf32> to vector<2x1xf32>
    %217 = vector.broadcast %216 : vector<2x1xf32> to vector<2x8xf32>
    %218 = arith.subf %212, %217 : vector<2x8xf32>
    %219 = math.exp %218 : vector<2x8xf32>
    %cst_101 = arith.constant dense<0.000000e+00> : vector<2x8xf32>
    %220 = tpu.matmul %219, %153, %cst_101 {dimension_numbers = #tpu.dot_dimension_numbers<[1], [0], [0], [1], [0, 0, 1, 1], [], []>} : vector<2x8xf32>, vector<8x8xf32>, vector<2x8xf32> -> vector<2x8xf32>
    %221 = vector.broadcast %216 : vector<2x1xf32> to vector<2x8xf32>
    %222 = arith.addf %213, %221 : vector<2x8xf32>
    %223 = math.log %220 : vector<2x8xf32>
    %224 = arith.addf %222, %223 : vector<2x8xf32>
    %cst_102 = arith.constant 0.000000e+00 : f32
    %225 = vector.broadcast %cst_102 : f32 to vector<2x1xf32>
    %226 = arith.cmpf ogt, %214, %225 : vector<2x1xf32>
    %227 = vector.shape_cast %226 : vector<2x1xi1> to vector<2x1xi1>
    %228 = vector.broadcast %227 : vector<2x1xi1> to vector<2x8xi1>
    %229 = arith.select %228, %224, %212 : vector<2x8xi1>, vector<2x8xf32>
    %c8 = arith.constant 8 : index
    %c0_103 = arith.constant 0 : index
    %230 = vector.load %arg22[%c8, %c0_103] : memref<16x8xf32, #tpu.memory_space<vmem>>, vector<2x8xf32>
    %c8_104 = arith.constant 8 : index
    %c0_105 = arith.constant 0 : index
    %231 = vector.load %arg1[%c8_104, %c0_105] : memref<16x1xf32, #tpu.memory_space<vmem>>, vector<2x1xf32>
    %cst_106 = arith.constant dense<0xFF800000> : vector<2xf32>
    %232 = vector.multi_reduction <maximumf>, %229, %cst_106 [1] : vector<2x8xf32> to vector<2xf32>
    %233 = vector.shape_cast %232 : vector<2xf32> to vector<2x1xf32>
    %234 = vector.broadcast %233 : vector<2x1xf32> to vector<2x8xf32>
    %235 = arith.subf %229, %234 : vector<2x8xf32>
    %236 = math.exp %235 : vector<2x8xf32>
    %cst_107 = arith.constant dense<0.000000e+00> : vector<2x8xf32>
    %237 = tpu.matmul %236, %153, %cst_107 {dimension_numbers = #tpu.dot_dimension_numbers<[1], [0], [0], [1], [0, 0, 1, 1], [], []>} : vector<2x8xf32>, vector<8x8xf32>, vector<2x8xf32> -> vector<2x8xf32>
    %238 = vector.broadcast %233 : vector<2x1xf32> to vector<2x8xf32>
    %239 = arith.addf %230, %238 : vector<2x8xf32>
    %240 = math.log %237 : vector<2x8xf32>
    %241 = arith.addf %239, %240 : vector<2x8xf32>
    %cst_108 = arith.constant 0.000000e+00 : f32
    %242 = vector.broadcast %cst_108 : f32 to vector<2x1xf32>
    %243 = arith.cmpf ogt, %231, %242 : vector<2x1xf32>
    %244 = vector.shape_cast %243 : vector<2x1xi1> to vector<2x1xi1>
    %245 = vector.broadcast %244 : vector<2x1xi1> to vector<2x8xi1>
    %246 = arith.select %245, %241, %229 : vector<2x8xi1>, vector<2x8xf32>
    %c10 = arith.constant 10 : index
    %c0_109 = arith.constant 0 : index
    %247 = vector.load %arg22[%c10, %c0_109] : memref<16x8xf32, #tpu.memory_space<vmem>>, vector<2x8xf32>
    %c10_110 = arith.constant 10 : index
    %c0_111 = arith.constant 0 : index
    %248 = vector.load %arg1[%c10_110, %c0_111] : memref<16x1xf32, #tpu.memory_space<vmem>>, vector<2x1xf32>
    %cst_112 = arith.constant dense<0xFF800000> : vector<2xf32>
    %249 = vector.multi_reduction <maximumf>, %246, %cst_112 [1] : vector<2x8xf32> to vector<2xf32>
    %250 = vector.shape_cast %249 : vector<2xf32> to vector<2x1xf32>
    %251 = vector.broadcast %250 : vector<2x1xf32> to vector<2x8xf32>
    %252 = arith.subf %246, %251 : vector<2x8xf32>
    %253 = math.exp %252 : vector<2x8xf32>
    %cst_113 = arith.constant dense<0.000000e+00> : vector<2x8xf32>
    %254 = tpu.matmul %253, %153, %cst_113 {dimension_numbers = #tpu.dot_dimension_numbers<[1], [0], [0], [1], [0, 0, 1, 1], [], []>} : vector<2x8xf32>, vector<8x8xf32>, vector<2x8xf32> -> vector<2x8xf32>
    %255 = vector.broadcast %250 : vector<2x1xf32> to vector<2x8xf32>
    %256 = arith.addf %247, %255 : vector<2x8xf32>
    %257 = math.log %254 : vector<2x8xf32>
    %258 = arith.addf %256, %257 : vector<2x8xf32>
    %cst_114 = arith.constant 0.000000e+00 : f32
    %259 = vector.broadcast %cst_114 : f32 to vector<2x1xf32>
    %260 = arith.cmpf ogt, %248, %259 : vector<2x1xf32>
    %261 = vector.shape_cast %260 : vector<2x1xi1> to vector<2x1xi1>
    %262 = vector.broadcast %261 : vector<2x1xi1> to vector<2x8xi1>
    %263 = arith.select %262, %258, %246 : vector<2x8xi1>, vector<2x8xf32>
    %c12 = arith.constant 12 : index
    %c0_115 = arith.constant 0 : index
    %264 = vector.load %arg22[%c12, %c0_115] : memref<16x8xf32, #tpu.memory_space<vmem>>, vector<2x8xf32>
    %c12_116 = arith.constant 12 : index
    %c0_117 = arith.constant 0 : index
    %265 = vector.load %arg1[%c12_116, %c0_117] : memref<16x1xf32, #tpu.memory_space<vmem>>, vector<2x1xf32>
    %cst_118 = arith.constant dense<0xFF800000> : vector<2xf32>
    %266 = vector.multi_reduction <maximumf>, %263, %cst_118 [1] : vector<2x8xf32> to vector<2xf32>
    %267 = vector.shape_cast %266 : vector<2xf32> to vector<2x1xf32>
    %268 = vector.broadcast %267 : vector<2x1xf32> to vector<2x8xf32>
    %269 = arith.subf %263, %268 : vector<2x8xf32>
    %270 = math.exp %269 : vector<2x8xf32>
    %cst_119 = arith.constant dense<0.000000e+00> : vector<2x8xf32>
    %271 = tpu.matmul %270, %153, %cst_119 {dimension_numbers = #tpu.dot_dimension_numbers<[1], [0], [0], [1], [0, 0, 1, 1], [], []>} : vector<2x8xf32>, vector<8x8xf32>, vector<2x8xf32> -> vector<2x8xf32>
    %272 = vector.broadcast %267 : vector<2x1xf32> to vector<2x8xf32>
    %273 = arith.addf %264, %272 : vector<2x8xf32>
    %274 = math.log %271 : vector<2x8xf32>
    %275 = arith.addf %273, %274 : vector<2x8xf32>
    %cst_120 = arith.constant 0.000000e+00 : f32
    %276 = vector.broadcast %cst_120 : f32 to vector<2x1xf32>
    %277 = arith.cmpf ogt, %265, %276 : vector<2x1xf32>
    %278 = vector.shape_cast %277 : vector<2x1xi1> to vector<2x1xi1>
    %279 = vector.broadcast %278 : vector<2x1xi1> to vector<2x8xi1>
    %280 = arith.select %279, %275, %263 : vector<2x8xi1>, vector<2x8xf32>
    %c14 = arith.constant 14 : index
    %c0_121 = arith.constant 0 : index
    %281 = vector.load %arg22[%c14, %c0_121] : memref<16x8xf32, #tpu.memory_space<vmem>>, vector<2x8xf32>
    %c14_122 = arith.constant 14 : index
    %c0_123 = arith.constant 0 : index
    %282 = vector.load %arg1[%c14_122, %c0_123] : memref<16x1xf32, #tpu.memory_space<vmem>>, vector<2x1xf32>
    %cst_124 = arith.constant dense<0xFF800000> : vector<2xf32>
    %283 = vector.multi_reduction <maximumf>, %280, %cst_124 [1] : vector<2x8xf32> to vector<2xf32>
    %284 = vector.shape_cast %283 : vector<2xf32> to vector<2x1xf32>
    %285 = vector.broadcast %284 : vector<2x1xf32> to vector<2x8xf32>
    %286 = arith.subf %280, %285 : vector<2x8xf32>
    %287 = math.exp %286 : vector<2x8xf32>
    %cst_125 = arith.constant dense<0.000000e+00> : vector<2x8xf32>
    %288 = tpu.matmul %287, %153, %cst_125 {dimension_numbers = #tpu.dot_dimension_numbers<[1], [0], [0], [1], [0, 0, 1, 1], [], []>} : vector<2x8xf32>, vector<8x8xf32>, vector<2x8xf32> -> vector<2x8xf32>
    %289 = vector.broadcast %284 : vector<2x1xf32> to vector<2x8xf32>
    %290 = arith.addf %281, %289 : vector<2x8xf32>
    %291 = math.log %288 : vector<2x8xf32>
    %292 = arith.addf %290, %291 : vector<2x8xf32>
    %cst_126 = arith.constant 0.000000e+00 : f32
    %293 = vector.broadcast %cst_126 : f32 to vector<2x1xf32>
    %294 = arith.cmpf ogt, %282, %293 : vector<2x1xf32>
    %295 = vector.shape_cast %294 : vector<2x1xi1> to vector<2x1xi1>
    %296 = vector.broadcast %295 : vector<2x1xi1> to vector<2x8xi1>
    %297 = arith.select %296, %292, %280 : vector<2x8xi1>, vector<2x8xf32>
    %298 = vector.broadcast %151 : vector<1x8xf32> to vector<2x8xf32>
    %299 = arith.addf %297, %298 : vector<2x8xf32>
    %cst_127 = arith.constant dense<0xFF800000> : vector<2xf32>
    %300 = vector.multi_reduction <maximumf>, %299, %cst_127 [1] : vector<2x8xf32> to vector<2xf32>
    %301 = vector.shape_cast %300 : vector<2xf32> to vector<2x1xf32>
    %302 = vector.broadcast %301 : vector<2x1xf32> to vector<2x8xf32>
    %303 = arith.subf %299, %302 : vector<2x8xf32>
    %304 = math.exp %303 : vector<2x8xf32>
    %cst_128 = arith.constant dense<0.000000e+00> : vector<2xf32>
    %305 = vector.multi_reduction <add>, %304, %cst_128 [1] : vector<2x8xf32> to vector<2xf32>
    %306 = vector.shape_cast %305 : vector<2xf32> to vector<2x1xf32>
    %307 = math.log %306 : vector<2x1xf32>
    %308 = arith.addf %301, %307 : vector<2x1xf32>
    %cst_129 = arith.constant dense<0.000000e+00> : vector<1xf32>
    %309 = vector.multi_reduction <add>, %308, %cst_129 [0] : vector<2x1xf32> to vector<1xf32>
    %310 = vector.shape_cast %309 : vector<1xf32> to vector<1x1xf32>
    %311 = tpu.iota {dimensions = array<i32: 1>} : vector<16x8xi32>
    %c0_130 = arith.constant 0 : index
    %c0_131 = arith.constant 0 : index
    %312 = vector.load %arg2[%c0_130, %c0_131] : memref<16x1xi32, #tpu.memory_space<vmem>>, vector<16x1xi32>
    %313 = vector.broadcast %312 : vector<16x1xi32> to vector<16x8xi32>
    %314 = arith.cmpi eq, %313, %311 : vector<16x8xi32>
    %315 = arith.extui %314 : vector<16x8xi1> to vector<16x8xi32>
    %316 = arith.sitofp %315 : vector<16x8xi32> to vector<16x8xf32>
    %c0_132 = arith.constant 0 : index
    %c0_133 = arith.constant 0 : index
    %317 = vector.load %arg3[%c0_132, %c0_133] : memref<16x1xi32, #tpu.memory_space<vmem>>, vector<16x1xi32>
    %318 = vector.broadcast %317 : vector<16x1xi32> to vector<16x8xi32>
    %319 = arith.cmpi eq, %318, %311 : vector<16x8xi32>
    %320 = arith.extui %319 : vector<16x8xi1> to vector<16x8xi32>
    %321 = arith.sitofp %320 : vector<16x8xi32> to vector<16x8xf32>
    %cst_134 = arith.constant dense<0.000000e+00> : vector<16x8xf32>
    %322 = tpu.matmul %316, %4, %cst_134 {dimension_numbers = #tpu.dot_dimension_numbers<[1], [0], [0], [1], [0, 0, 1, 1], [], []>} : vector<16x8xf32>, vector<8x8xf32>, vector<16x8xf32> -> vector<16x8xf32>
    %323 = arith.mulf %322, %321 : vector<16x8xf32>
    %cst_135 = arith.constant dense<0.000000e+00> : vector<16xf32>
    %324 = vector.multi_reduction <add>, %323, %cst_135 [1] : vector<16x8xf32> to vector<16xf32>
    %325 = vector.shape_cast %324 : vector<16xf32> to vector<16x1xf32>
    %326 = arith.mulf %103, %316 : vector<16x8xf32>
    %cst_136 = arith.constant dense<0.000000e+00> : vector<16xf32>
    %327 = vector.multi_reduction <add>, %326, %cst_136 [1] : vector<16x8xf32> to vector<16xf32>
    %328 = vector.shape_cast %327 : vector<16xf32> to vector<16x1xf32>
    %329 = vector.broadcast %151 : vector<1x8xf32> to vector<16x8xf32>
    %330 = arith.mulf %316, %329 : vector<16x8xf32>
    %cst_137 = arith.constant dense<0.000000e+00> : vector<16xf32>
    %331 = vector.multi_reduction <add>, %330, %cst_137 [1] : vector<16x8xf32> to vector<16xf32>
    %332 = vector.shape_cast %331 : vector<16xf32> to vector<16x1xf32>
    %333 = vector.broadcast %1 : vector<16x1xf32> to vector<16x2xf32>
    %334 = arith.mulf %2, %333 : vector<16x2xf32>
    %cst_138 = arith.constant dense<0.000000e+00> : vector<2xf32>
    %335 = vector.multi_reduction <add>, %334, %cst_138 [0] : vector<16x2xf32> to vector<2xf32>
    %336 = vector.shape_cast %335 : vector<2xf32> to vector<1x2xf32>
    %337 = vector.broadcast %336 : vector<1x2xf32> to vector<16x2xf32>
    %338 = arith.mulf %2, %337 : vector<16x2xf32>
    %cst_139 = arith.constant dense<0.000000e+00> : vector<16xf32>
    %339 = vector.multi_reduction <add>, %338, %cst_139 [1] : vector<16x2xf32> to vector<16xf32>
    %340 = vector.shape_cast %339 : vector<16xf32> to vector<16x1xf32>
    %c0_140 = arith.constant 0 : index
    %c0_141 = arith.constant 0 : index
    %341 = vector.load %arg7[%c0_140, %c0_141] : memref<16x1xf32, #tpu.memory_space<vmem>>, vector<16x1xf32>
    %cst_142 = arith.constant 1.000000e+00 : f32
    %342 = vector.broadcast %cst_142 : f32 to vector<16x1xf32>
    %343 = arith.addf %341, %342 : vector<16x1xf32>
    %344 = arith.cmpf oeq, %343, %340 : vector<16x1xf32>
    %345 = arith.extui %344 : vector<16x1xi1> to vector<16x1xi32>
    %346 = arith.sitofp %345 : vector<16x1xi32> to vector<16x1xf32>
    %347 = arith.addf %325, %328 : vector<16x1xf32>
    %348 = arith.mulf %1, %347 : vector<16x1xf32>
    %349 = arith.mulf %346, %332 : vector<16x1xf32>
    %350 = arith.addf %348, %349 : vector<16x1xf32>
    %351 = vector.broadcast %350 : vector<16x1xf32> to vector<16x2xf32>
    %352 = arith.mulf %2, %351 : vector<16x2xf32>
    %cst_143 = arith.constant dense<0.000000e+00> : vector<2xf32>
    %353 = vector.multi_reduction <add>, %352, %cst_143 [0] : vector<16x2xf32> to vector<2xf32>
    %354 = vector.shape_cast %353 : vector<2xf32> to vector<1x2xf32>
    %cst_144 = arith.constant dense<0.000000e+00> : vector<1xf32>
    %355 = vector.multi_reduction <add>, %354, %cst_144 [1] : vector<1x2xf32> to vector<1xf32>
    %356 = vector.shape_cast %355 : vector<1xf32> to vector<1x1xf32>
    %357 = arith.mulf %151, %150 : vector<1x8xf32>
    %cst_145 = arith.constant dense<0.000000e+00> : vector<1xf32>
    %358 = vector.multi_reduction <add>, %357, %cst_145 [1] : vector<1x8xf32> to vector<1xf32>
    %359 = vector.shape_cast %358 : vector<1xf32> to vector<1x1xf32>
    %cst_146 = arith.constant 0.000000e+00 : f32
    %360 = vector.broadcast %cst_146 : f32 to vector<1x2xf32>
    %361 = arith.cmpf oeq, %336, %360 : vector<1x2xf32>
    %cst_147 = arith.constant 1.000000e+00 : f32
    %cst_148 = arith.constant 0.000000e+00 : f32
    %362 = vector.broadcast %cst_147 : f32 to vector<1x2xf32>
    %363 = vector.broadcast %cst_148 : f32 to vector<1x2xf32>
    %364 = arith.select %361, %362, %363 : vector<1x2xi1>, vector<1x2xf32>
    %cst_149 = arith.constant dense<0.000000e+00> : vector<1xf32>
    %365 = vector.multi_reduction <add>, %364, %cst_149 [1] : vector<1x2xf32> to vector<1xf32>
    %366 = vector.shape_cast %365 : vector<1xf32> to vector<1x1xf32>
    %367 = arith.mulf %366, %359 : vector<1x1xf32>
    %368 = arith.addf %356, %367 : vector<1x1xf32>
    %369 = arith.subf %310, %368 : vector<1x1xf32>
    %cst_150 = arith.constant 2.000000e+00 : f32
    %370 = vector.broadcast %cst_150 : f32 to vector<1x1xf32>
    %371 = arith.divf %369, %370 : vector<1x1xf32>
    %cst_151 = arith.constant 2.000000e-01 : f32
    %372 = vector.broadcast %cst_151 : f32 to vector<1x1xf32>
    %373 = arith.mulf %372, %144 : vector<1x1xf32>
    %cst_152 = arith.constant 8.000000e-01 : f32
    %374 = vector.broadcast %cst_152 : f32 to vector<1x1xf32>
    %375 = arith.mulf %374, %371 : vector<1x1xf32>
    %376 = arith.addf %373, %375 : vector<1x1xf32>
    %c0_153 = arith.constant 0 : index
    %c0_154 = arith.constant 0 : index
    %377 = vector.load %arg21[%c0_153, %c0_154] : memref<1x1xf32, #tpu.memory_space<vmem>>, vector<1x1xf32>
    tpu.vector_store %arg21[%c0_153, %c0_154], %376 {strides = array<i32>} : memref<1x1xf32, #tpu.memory_space<vmem>>, vector<1x1xf32>,
    return
  }
}

</mosaic_0001>

<bundles_post_ra>
// kernel: classify_extractor_forward.1
= control target key start
LH: loop header
LB: loop body
LE: loop exit
PB: predicated region body
PF: predicated region fallthrough
CT: control target
= control target key end

     0   :  { %s3117_s0 = inlined_call_operand.vmem [shape: f32[16,32], index: 0, kind: input, shape index: {}]   ;;  %s3118_s1 = inlined_call_operand.vmem [shape: f32[16,1], index: 1, kind: input, shape index: {}]   ;;  %s3119_s2 = inlined_call_operand.vmem [shape: s32[16,1], index: 2, kind: input, shape index: {}]   ;;  %s3120_s3 = inlined_call_operand.vmem [shape: s32[16,1], index: 3, kind: input, shape index: {}]   ;;  %s3121_s4 = inlined_call_operand.vmem [shape: s32[2,1], index: 4, kind: input, shape index: {}]   ;;  %s3122_s5 = inlined_call_operand.vmem [shape: f32[16,2], index: 5, kind: input, shape index: {}]   ;;  %s3123_s6 = inlined_call_operand.vmem [shape: f32[2,16], index: 6, kind: input, shape index: {}]   ;;  %s3124_s7 = inlined_call_operand.vmem [shape: f32[16,1], index: 7, kind: input, shape index: {}]   ;;  %s3125_s8 = inlined_call_operand.vmem [shape: f32[32,16], index: 8, kind: input, shape index: {}]   ;;  %s3126_s9 = inlined_call_operand.vmem [shape: f32[8,16], index: 9, kind: input, shape index: {}]   ;;  %s3127_s10 = inlined_call_operand.vmem [shape: f32[1,16], index: 10, kind: input, shape index: {}]   ;;  %s3128_s11 = inlined_call_operand.vmem [shape: f32[32,16], index: 11, kind: input, shape index: {}]   ;;  %s3129_s12 = inlined_call_operand.vmem [shape: f32[1,16], index: 12, kind: input, shape index: {}]   ;;  %s3130_s13 = inlined_call_operand.vmem [shape: f32[1,16], index: 13, kind: input, shape index: {}]   ;;  %s3131_s14 = inlined_call_operand.vmem [shape: f32[16,8], index: 14, kind: input, shape index: {}]   ;;  %s3132_s15 = inlined_call_operand.vmem [shape: f32[32,16], index: 15, kind: input, shape index: {}]   ;;  %s3133_s16 = inlined_call_operand.vmem [shape: f32[8,16], index: 16, kind: input, shape index: {}]   ;;  %s3134_s17 = inlined_call_operand.vmem [shape: f32[1,16], index: 17, kind: input, shape index: {}]   ;;  %s3135_s18 = inlined_call_operand.vmem [shape: f32[16,2], index: 18, kind: input, shape index: {}]   ;;  %s3136_s19 = inlined_call_operand.vmem [shape: f32[8,8], index: 19, kind: input, shape index: {}]   ;;  %s3137_s20 = inlined_call_operand.vmem [shape: f32[8,8], index: 20, kind: input, shape index: {}]   ;;  %s3138_s21 = inlined_call_operand.hbm [shape: f32[1,1], index: 21, kind: output, shape index: {}]  }
   0x1   :  { %3144 = sst [smem:[#allocation6_spill]] %s3117_s0 }
   0x2   :  { %3145 = sst [smem:[#allocation7_spill]] %s3118_s1 }
   0x3   :  { %3146 = sst [smem:[#allocation8_spill]] %s3119_s2 }
   0x4   :  { %3147 = sst [smem:[#allocation9_spill]] %s3120_s3 }
   0x5   :  { %3148 = sst [smem:[#allocation10_spill]] %s3121_s4 }
   0x6   :  { %3149 = sst [smem:[#allocation11_spill]] %s3122_s5 }
   0x7   :  { %v77_v0 = vld [vmem:[%s3125_s8] sm:$0xff]  ;;  %v78_v1 = vld [vmem:[%s3125_s8 + $0x8] sm:$0xff]  ;;  %v79_v2 = vld [vmem:[%s3125_s8 + $0x10] sm:$0xff]  ;;  %vm81_vm0 = vcmask 261120   ;;  %s3150_s5 = sld [smem:[#allocation6_spill]] }
   0x8   :  { %v2378_v3 = vpack.c.bf16 %v78_v1, %v77_v0  ;;  %v80_v4 = vld [vmem:[%s3125_s8 + $0x18] sm:$0xff] }
   0x9   :  { %v2382_v6 = vpack.c.bf16 %v80_v4, %v79_v2 }
   0xd   :  { %v2660_v5 = vld [vmem:[%s3150_s5] sm:$0xff] }
   0xe   :  { %2263 = vmatprep.mubr.msk.f32.mxu0 %vm81_vm0, %v2660_v5  ;;  %2274 = vmatprep.mubr.msk.f32.mxu1 %vm81_vm0, %v2660_v5 }
   0xf   :  { %26 = vsyncpa [#allocation4], 0  ;;  %2379 = vmatprep.subr.bf16.mxu0 %v2378_v3  ;;  %v2669_v7 = vld [vmem:[%s3150_s5 + $0x8] sm:$0xff]  ;;  %v2682_v10 = vld [vmem:[%s3127_s10] ss:$0 sm:$0xff]  ;;  %vm264_vm1 = vcmask 130048  }
  0x10   :  { %2381 = vmatpush3.bf16.msra.mxu0 %v2378_v3  ;;  %v2529_v17 = vmov 0   ;;  %s3151_s2 = sld [smem:[#allocation7_spill]]  ;;  %s3152_s28 = sld [smem:[#allocation11_spill]]  ;;  %vm289_vm6 = vcmask 15360   ;;  %v163_v51 = vld [vmem:[%s3128_s11] sm:$0xff]  ;;  %v164_v52 = vld [vmem:[%s3128_s11 + $0x8] sm:$0xff] }
  0x11   :  { %2383 = vmatprep.subr.bf16.mxu0 %v2382_v6  ;;  %2423 = vset.pattern.permute.xlu1 %v2529_v17  ;;  %v165_v53 = vld [vmem:[%s3128_s11 + $0x10] sm:$0xff]  ;;  %v2386_v54 = vpack.c.bf16 %v164_v52, %v163_v51  ;;  %v166_v55 = vld [vmem:[%s3128_s11 + $0x18] sm:$0xff]  ;;  %vm453_vm7 = vcmask 64512   ;;  %vm2531_vm9 = vmmov 0   ;;  %vm1256_vm13 = vcmask 58368   ;;  %s3154_s27 = sld [smem:[#allocation9_spill]] }
  0x12   :  { %2424 = vset.pattern.permute.xlu0 %v2529_v17  ;;  %v2390_v56 = vpack.c.bf16 %v166_v55, %v165_v53  ;;  %s3155_s10 = sld [smem:[#allocation10_spill]] }
  0x13   :  { %2387 = vmatprep.subr.bf16.mxu1 %v2386_v54 }
  0x14   :  { %2385 = vmatpush3.bf16.msra.mxu0 %v2382_v6  ;;  %2389 = vmatpush3.bf16.msra.mxu1 %v2386_v54 }
  0x15   :  { %2391 = vmatprep.subr.bf16.mxu1 %v2390_v56 }
  0x16   :  { %v2693_v18 = vld [vmem:[%s3151_s2] sm:$0xff]  ;;  %v2699_v19 = vld [vmem:[%s3151_s2 + $0x8] sm:$0xff] }
  0x17   :  { %2264 = vmatmul.mubr.msk.f32.vlgmr.msra.gmra.mrb[0].mxu0 %vm81_vm0, %v2669_v7  ;;  %vm271_vm2 = vcmp.gt.f32.partialorder %v2693_v18, 0.0  ;;  %vm272_vm3 = vcmp.gt.f32.partialorder %v2699_v19, 0.0  ;;  %v2709_v24 = vld [vmem:[%s3152_s28] sm:$0xff]  ;;  %v2714_v25 = vld [vmem:[%s3152_s28 + $0x8] sm:$0xff] }
  0x18   :  { %vm275_vm4 = vcmp.gt.f32.partialorder %v2709_v24, 0.0  ;;  %vm276_vm5 = vcmp.gt.f32.partialorder %v2714_v25, 0.0  ;;  %2393 = vmatpush3.bf16.msra.mxu1 %v2390_v56 }
  0x1b   :  { %2275 = vmatmul.mubr.msk.f32.vlgmr.msra.gmra.mrb[0].mxu1 %vm81_vm0, %v2669_v7 }
  0xea   :  { %v2673_v8 = vpop.f32.mrb[0].mxu0 }
  0xeb   :  { %2425 = vtanh.f32 %v2673_v8  ;;  %v2676_v9 = vpop.f32.mrb[1].mxu0 }
  0xec   :  { %2427 = vtanh.f32 %v2676_v9 }
  0xf5   :  { %v2426_v11 = vpop.eup %2425 }
  0xf6   :  { %v2428_v12 = vpop.eup %2427  ;;  %v263_v15 = vmul.f32 %v2426_v11, %v2682_v10 }
  0xf7   :  { %v262_v13 = vmul.f32 %v2428_v12, %v2682_v10 }
  0xf8   :  { %v268_v16 = vsel %vm264_vm1, %v263_v15, 0.0  ;;  %v2276_v15 = vpop.f32.mrb[0].mxu1 }
  0xf9   :  { %v265_v14 = vsel %vm264_vm1, %v262_v13, 0.0 }
  0xfa   :  { %266 = vadd.xlane.f32.xlu0 %v265_v14 }
  0xfe   :  { %269 = vadd.xlane.f32.xlu0 %v268_v16  ;;  %v240_v16 = vpop.f32.mrb[1].mxu1 }
 0x187   :  { %v267_v20 = vpop.xlane.xlu0 %266 }
 0x188   :  { %v273_v21 = vsel %vm271_vm2, %v267_v20, -1e+30 }
 0x189   :  { %279 = vperm.xlu1 %2423, %v273_v21  }
 0x18b   :  { %v270_v22 = vpop.xlane.xlu0 %269 }
 0x18c   :  { %v274_v23 = vsel %vm272_vm3, %v270_v22, -1e+30 }
 0x18d   :  { %284 = vperm.xlu1 %2423, %v274_v23  }
 0x208   :  { %v280_v26 = vpop.permute.xlu1 %279 }
 0x209   :  { %v287_v27 = vsel %vm275_vm4, %v280_v26, -1e+30 }
 0x20a   :  { %v290_v30 = vsel %vm289_vm6, %v287_v27, -inf }
 0x20c   :  { %v285_v28 = vpop.permute.xlu1 %284 }
 0x20d   :  { %v288_v29 = vsel %vm276_vm5, %v285_v28, -1e+30  ;;  %v252_v28 = vld [vmem:[%s3131_s14] sm:$0xff] }
 0x20e   :  { %v291_v31 = vsel %vm289_vm6, %v288_v29, -inf  ;;  %v253_v29 = vld [vmem:[%s3131_s14 + $0x8] sm:$0xff] }
 0x20f   :  { %v292_v32 = vmax.f32 %v290_v30, %v291_v31  ;;  %v2394_v30 = vpack.c.bf16 %v253_v29, %v252_v28  ;;  %v251_v31 = vld [vmem:[%s3126_s9] sm:$0xff] }
 0x210   :  { %2284 = vmatprep.subr.mxu1 %v251_v31 }
 0x211   :  { %v293_v33 = vrot.slane %v292_v32, 4  ;;  %2395 = vmatprep.subr.bf16.mxu0 %v2394_v30  ;;  %2285 = vmatpush3.msra.mxu1 %v251_v31 }
 0x212   :  { %2397 = vmatpush3.bf16.msra.mxu0 %v2394_v30 }
 0x213   :  { %v294_v34 = vmax.f32 %v292_v32, %v293_v33  ;;  %2399 = vmatprep.subr.bf16.mxu0 %v2394_v30  ;;  %v2162_v32 = vld [vmem:[%s3130_s13] ss:$0 sm:$0xff] }
 0x214   :  { %v2771_v33 = vld [vmem:[%s3129_s12] ss:$0 sm:$0xff] }
 0x215   :  { %v295_v35 = vrot.slane %v294_v34, 2 }
 0x217   :  { %v296_v36 = vmax.f32 %v294_v34, %v295_v35  ;;  %v2773_v34 = vadd.f32 %v2276_v15, %v2162_v32  ;;  %v2775_v35 = vadd.f32 %v2162_v32, %v240_v16 }
 0x219   :  { %v297_v37 = vrot.slane %v296_v36, 1 }
 0x21b   :  { %v298_v38 = vmax.f32 %v296_v36, %v297_v37 }
 0x21d   :  { %v300_v39 = vmul.f32 %v298_v38, %v2714_v25  ;;  %v299_v40 = vmul.f32 %v298_v38, %v2709_v24 }
 0x21f   :  { %v304_v41 = vsel %vm289_vm6, %v300_v39, 0.0  ;;  %v301_v42 = vsel %vm289_vm6, %v299_v40, 0.0 }
 0x220   :  { %305 = vadd.xlane.f32.xlu1 %v304_v41  ;;  %302 = vadd.xlane.f32.xlu0 %v301_v42 }
 0x2ad   :  { %v306_v43 = vpop.xlane.xlu1 %305  ;;  %v303_v44 = vpop.xlane.xlu0 %302 }
 0x2ae   :  { %v308_v45 = vsub.f32 %v274_v23, %v306_v43  ;;  %v307_v46 = vsub.f32 %v273_v21, %v303_v44 }
 0x2b0   :  { %v311_v47 = vmul.f32 1.442695, %v308_v45  ;;  %v309_v48 = vmul.f32 1.442695, %v307_v46 }
 0x2b2   :  { %2429 = vpow2.f32 %v311_v47 }
 0x2b3   :  { %2431 = vpow2.f32 %v309_v48 }
 0x2bc   :  { %v2430_v49 = vpop.eup %2429 }
 0x2bd   :  { %v2432_v50 = vpop.eup %2431  ;;  %320 = vperm.xlu1 %2423, %v2430_v49  }
 0x2be   :  { %315 = vperm.xlu0 %2424, %v2432_v50  }
 0x33c   :  { %v321_v57 = vpop.permute.xlu1 %320 }
 0x33d   :  { %v324_v58 = vmul.f32 %v321_v57, %v2714_v25  ;;  %v316_v59 = vpop.permute.xlu0 %315 }
 0x33e   :  { %v323_v60 = vmul.f32 %v316_v59, %v2709_v24 }
 0x33f   :  { %v326_v61 = vsel %vm289_vm6, %v324_v58, 0.0 }
 0x340   :  { %v325_v62 = vsel %vm289_vm6, %v323_v60, 0.0 }
 0x341   :  { %v327_v63 = vadd.f32 %v326_v61, %v325_v62 }
 0x343   :  { %v328_v0 = vrot.slane %v327_v63, 4 }
 0x345   :  { %v329_v1 = vadd.f32 %v328_v0, %v327_v63 }
 0x347   :  { %v330_v2 = vrot.slane %v329_v1, 2 }
 0x349   :  { %v331_v3 = vadd.f32 %v330_v2, %v329_v1 }
 0x34b   :  { %v332_v4 = vrot.slane %v331_v3, 1 }
 0x34d   :  { %v333_v6 = vadd.f32 %v332_v4, %v331_v3 }
 0x34f   :  { %v335_v11 = vmul.f32 %v333_v6, %v2714_v25  ;;  %v334_v12 = vmul.f32 %v333_v6, %v2709_v24 }
 0x351   :  { %v339_v13 = vsel %vm289_vm6, %v335_v11, 0.0  ;;  %v336_v14 = vsel %vm289_vm6, %v334_v12, 0.0 }
 0x352   :  { %340 = vadd.xlane.f32.xlu1 %v339_v13  ;;  %337 = vadd.xlane.f32.xlu0 %v336_v14 }
 0x3df   :  { %v341_v20 = vpop.xlane.xlu1 %340  ;;  %v338_v21 = vpop.xlane.xlu0 %337 }
 0x3e0   :  { %2433 = vrcp.f32 %v341_v20 }
 0x3e1   :  { %2435 = vrcp.f32 %v338_v21 }
 0x3ea   :  { %v2434_v22 = vpop.eup %2433 }
 0x3eb   :  { %v2436_v23 = vpop.eup %2435  ;;  %v2750_v26 = vmul.f32 %v2434_v22, %v2430_v49 }
 0x3ec   :  { %v2752_v27 = vmul.f32 %v2436_v23, %v2432_v50 }
 0x3ed   :  { %355 = vperm.xlu1 %2423, %v2750_v26  }
 0x3ee   :  { %350 = vperm.xlu0 %2424, %v2752_v27  }
 0x46c   :  { %v356_v36 = vpop.permute.xlu1 %355 }
 0x46d   :  { %v365_v37 = vmul.f32 %v2771_v33, %v356_v36  ;;  %v351_v38 = vpop.permute.xlu0 %350 }
 0x46e   :  { %v364_v39 = vmul.f32 %v2771_v33, %v351_v38 }
 0x46f   :  { %v367_v40 = vadd.f32 %v365_v37, %v2773_v34 }
 0x470   :  { %v366_v41 = vadd.f32 %v364_v39, %v2775_v35 }
 0x471   :  { %2437 = vtanh.f32 %v367_v40 }
 0x472   :  { %2439 = vtanh.f32 %v366_v41 }
 0x47b   :  { %v2438_v42 = vpop.eup %2437 }
 0x47c   :  { %v2440_v43 = vpop.eup %2439 }
 0x47d   :  { %2281 = vmatprep.mubr.msk.f32.mxu0 %vm264_vm1, %v2440_v43 }
 0x47e   :  { %2282 = vmatmul.mubr.msk.f32.vlgmr.msra.gmra.mrb[2].mxu0 %vm264_vm1, %v2438_v42 }
 0x47f   :  { %2401 = vmatpush3.bf16.msra.mxu0 %v2394_v30 }
 0x551   :  { %v2783_v44 = vpop.f32.mrb[2].mxu0 }
 0x552   :  { %v2785_v45 = vpop.f32.mrb[3].mxu0 }
 0x553   :  { %2286 = vmatprep.mubr.msk.f32.mxu1 %vm453_vm7, %v2785_v45 }
 0x554   :  { %2287 = vmatmul.mubr.msk.f32.vlgmr.msra.gmra.mrb[2].mxu1 %vm453_vm7, %v2783_v44 }
 0x627   :  { %v2288_v46 = vpop.f32.mrb[2].mxu1 }
 0x628   :  { %v536_v47 = vadd.f32 %v2288_v46, %v2673_v8  ;;  %v526_v48 = vpop.f32.mrb[3].mxu1 }
 0x629   :  { %v535_v49 = vadd.f32 %v526_v48, %v2676_v9 }
 0x62a   :  { %2441 = vtanh.f32 %v536_v47 }
 0x62b   :  { %2443 = vtanh.f32 %v535_v49 }
 0x634   :  { %v2442_v50 = vpop.eup %2441 }
 0x635   :  { %v2444_v51 = vpop.eup %2443  ;;  %v540_v52 = vmul.f32 %v2442_v50, %v2682_v10 }
 0x636   :  { %v539_v53 = vmul.f32 %v2444_v51, %v2682_v10 }
 0x637   :  { %v544_v54 = vsel %vm264_vm1, %v540_v52, 0.0 }
 0x638   :  { %545 = vadd.xlane.f32.xlu1 %v544_v54  ;;  %v541_v55 = vsel %vm264_vm1, %v539_v53, 0.0 }
 0x639   :  { %542 = vadd.xlane.f32.xlu0 %v541_v55 }
 0x6c5   :  { %v546_v56 = vpop.xlane.xlu1 %545 }
 0x6c6   :  { %v548_v8 = vsel %vm272_vm3, %v546_v56, -1e+30  ;;  %v543_v57 = vpop.xlane.xlu0 %542 }
 0x6c7   :  { %v547_v9 = vsel %vm271_vm2, %v543_v57, -1e+30  ;;  %556 = vperm.xlu1 %2423, %v548_v8  }
 0x6c8   :  { %551 = vperm.xlu0 %2424, %v547_v9  }
 0x746   :  { %v557_v58 = vpop.permute.xlu1 %556 }
 0x747   :  { %v560_v10 = vsel %vm276_vm5, %v557_v58, -1e+30  ;;  %v552_v59 = vpop.permute.xlu0 %551 }
 0x748   :  { %v562_v60 = vsel %vm289_vm6, %v560_v10, -inf  ;;  %v559_v61 = vsel %vm275_vm4, %v552_v59, -1e+30  ;;  %v2530_v59 = vmov 0.0|0.0  }
 0x749   :  { %v561_v62 = vsel %vm289_vm6, %v559_v61, -inf  ;;  %2402 = vmatprep.subr.bf16.mxu1 %v2530_v59  ;;  %2405 = vmatprep.subr.bf16.mxu0 %v2530_v59 }
 0x74a   :  { %v563_v63 = vmax.f32 %v561_v62, %v562_v60  ;;  %v1127_v60 = vlaneseq  ;;  %v2533_v62 = vmov -10000.0  }
 0x74c   :  { %v564_v0 = vrot.slane %v563_v63, 4  ;;  %v2826_v61 = vand.u32 127, %v1127_v60 }
 0x74e   :  { %v565_v1 = vmax.f32 %v563_v63, %v564_v0  ;;  %vm1152_vm10 = vcmp.eq.s32.totalorder %v2826_v61, 0 }
 0x750   :  { %v566_v2 = vrot.slane %v565_v1, 2 }
 0x752   :  { %v567_v3 = vmax.f32 %v565_v1, %v566_v2  ;;  %v1255_v1 = vld [vmem:[%s3151_s2 + $0x2] sm:$0x3] }
 0x753   :  { %vm1340_vm12 = vcmp.gt.f32.partialorder %v1255_v1, 0.0 }
 0x754   :  { %v568_v4 = vrot.slane %v567_v3, 1  ;;  %v1341_v2 = vsel %vm1340_vm12, 1, %v2529_v17 }
 0x756   :  { %v569_v6 = vmax.f32 %v567_v3, %v568_v4 }
 0x758   :  { %v571_v11 = vmul.f32 %v569_v6, %v2714_v25  ;;  %v570_v12 = vmul.f32 %v569_v6, %v2709_v24 }
 0x75a   :  { %v575_v13 = vsel %vm289_vm6, %v571_v11, 0.0  ;;  %v572_v14 = vsel %vm289_vm6, %v570_v12, 0.0 }
 0x75b   :  { %576 = vadd.xlane.f32.xlu1 %v575_v13  ;;  %573 = vadd.xlane.f32.xlu0 %v572_v14 }
 0x7e8   :  { %v577_v15 = vpop.xlane.xlu1 %576  ;;  %v574_v16 = vpop.xlane.xlu0 %573 }
 0x7e9   :  { %v579_v20 = vsub.f32 %v548_v8, %v577_v15  ;;  %v578_v21 = vsub.f32 %v547_v9, %v574_v16  ;;  %v1163_v9 = vld [vmem:[%s3151_s2] sm:$0x3] }
 0x7ea   :  { %vm1247_vm8 = vcmp.gt.f32.partialorder %v1163_v9, 0.0 }
 0x7eb   :  { %v582_v22 = vmul.f32 1.442695, %v579_v20  ;;  %v580_v23 = vmul.f32 1.442695, %v578_v21  ;;  %v1248_v10 = vsel %vm1247_vm8, 1, %v2529_v17 }
 0x7ed   :  { %2445 = vpow2.f32 %v582_v22 }
 0x7ee   :  { %2447 = vpow2.f32 %v580_v23 }
 0x7f7   :  { %v2446_v28 = vpop.eup %2445 }
 0x7f8   :  { %v2448_v29 = vpop.eup %2447  ;;  %591 = vperm.xlu1 %2423, %v2446_v28  }
 0x7f9   :  { %586 = vperm.xlu0 %2424, %v2448_v29  }
 0x877   :  { %v592_v30 = vpop.permute.xlu1 %591 }
 0x878   :  { %v595_v31 = vmul.f32 %v592_v30, %v2714_v25  ;;  %v587_v32 = vpop.permute.xlu0 %586  ;;  %v879_v30 = vld [vmem:[%s3132_s15 + $0x10] sm:$0xff] }
 0x879   :  { %v594_v36 = vmul.f32 %v587_v32, %v2709_v24 }
 0x87a   :  { %v597_v37 = vsel %vm289_vm6, %v595_v31, 0.0  ;;  %v880_v31 = vld [vmem:[%s3132_s15 + $0x18] sm:$0xff] }
 0x87b   :  { %v596_v38 = vsel %vm289_vm6, %v594_v36, 0.0  ;;  %v2412_v32 = vpack.c.bf16 %v880_v31, %v879_v30  ;;  %v881_v36 = vld [vmem:[%s3133_s16] sm:$0xff] }
 0x87c   :  { %v598_v39 = vadd.f32 %v597_v37, %v596_v38  ;;  %v1348_v31 = vld [vmem:[%s3151_s2 + $0x4] sm:$0x3] }
 0x87e   :  { %v599_v40 = vrot.slane %v598_v39, 4 }
 0x880   :  { %v600_v41 = vadd.f32 %v599_v40, %v598_v39 }
 0x882   :  { %v601_v42 = vrot.slane %v600_v41, 2 }
 0x884   :  { %v602_v43 = vadd.f32 %v601_v42, %v600_v41 }
 0x886   :  { %v603_v46 = vrot.slane %v602_v43, 1 }
 0x888   :  { %v604_v47 = vadd.f32 %v603_v46, %v602_v43 }
 0x88a   :  { %v606_v48 = vmul.f32 %v604_v47, %v2714_v25  ;;  %v605_v49 = vmul.f32 %v604_v47, %v2709_v24 }
 0x88c   :  { %v610_v50 = vsel %vm289_vm6, %v606_v48, 0.0  ;;  %v607_v51 = vsel %vm289_vm6, %v605_v49, 0.0  ;;  %v1156_v48 = vld [vmem:[%s3137_s20] sm:$0xff] }
 0x88d   :  { %611 = vadd.xlane.f32.xlu1 %v610_v50  ;;  %608 = vadd.xlane.f32.xlu0 %v607_v51  ;;  %v1157_v49 = vmul.f32 1.442695, %v1156_v48 }
 0x91a   :  { %v612_v52 = vpop.xlane.xlu1 %611  ;;  %v609_v53 = vpop.xlane.xlu0 %608 }
 0x91b   :  { %2449 = vrcp.f32 %v612_v52 }
 0x91c   :  { %2451 = vrcp.f32 %v609_v53 }
 0x925   :  { %v2450_v54 = vpop.eup %2449 }
 0x926   :  { %v2452_v55 = vpop.eup %2451  ;;  %v616_v56 = vmul.f32 %v2450_v54, %v2446_v28 }
 0x927   :  { %v614_v8 = vmul.f32 %v2452_v55, %v2448_v29  ;;  %v75_v29 = vld [vmem:[%s3123_s6] sm:$0x3]  ;;  %s3153_s6 = sld [smem:[#allocation8_spill]] }
 0x928   :  { %626 = vperm.xlu1 %2423, %v616_v56   ;;  %v618_v58 = vadd.f32 %v616_v56, %v2750_v26  ;;  %v2177_v56 = vld [vmem:[%s3134_s17] ss:$0 sm:$0xff] }
 0x929   :  { %621 = vperm.xlu0 %2424, %v614_v8   ;;  %v617_v57 = vadd.f32 %v614_v8, %v2752_v27  ;;  %v2532_v27 = vmov 0.0  }
 0x92a   :  { %2300 = vmatprep.mubr.msk.f32.mxu1 %vm2531_vm9, %v2532_v27  ;;  %v2832_v26 = vsel %vm1152_vm10, 1.0, %v2532_v27 }
 0x92b   :  { %vm1159_vm11 = vcmp.gt.f32.partialorder %v2832_v26, 0.0 }
 0x92c   :  { %v2835_v63 = vsel %vm1159_vm11, 0.0, %v2533_v62 }
 0x92d   :  { %724 = vperm.xlu0 %2424, %v617_v57   ;;  %v1164_v0 = vsel %vm453_vm7, %v2835_v63, -inf }
 0x931   :  { %729 = vperm.xlu0 %2424, %v618_v58  }
 0x935   :  { %1250 = vperm.xlu0 %2424, %v1248_v10  }
 0x94c   :  { %1165 = vmax.xlane.f32.xlu1 %v1164_v0 }
 0x95d   :  { %1343 = vperm.xlu1 %2423, %v1341_v2  }
 0x9a7   :  { %v627_v3 = vpop.permute.xlu1 %626 }
 0x9a8   :  { %v630_v4 = vmul.f32 %v2783_v44, %v627_v3  ;;  %v634_v6 = vmul.f32 %v2771_v33, %v627_v3  ;;  %v622_v11 = vpop.permute.xlu0 %621 }
 0x9a9   :  { %v629_v12 = vmul.f32 %v622_v11, %v2785_v45  ;;  %v633_v13 = vmul.f32 %v2771_v33, %v622_v11 }
 0x9aa   :  { %v636_v14 = vadd.f32 %v634_v6, %v2773_v34 }
 0x9ab   :  { %v635_v15 = vadd.f32 %v633_v13, %v2775_v35  ;;  %v2406_v16 = vpack.c.bf16 %v630_v4, %v629_v12  ;;  %v877_v35 = vld [vmem:[%s3132_s15] sm:$0xff] }
 0x9ac   :  { %2453 = vtanh.f32 %v636_v14  ;;  %v725_v20 = vpop.permute.xlu0 %724 }
 0x9ad   :  { %2455 = vtanh.f32 %v635_v15  ;;  %v732_v22 = vmul.f32 %v725_v20, %v2660_v5  ;;  %v878_v5 = vld [vmem:[%s3132_s15 + $0x8] sm:$0xff] }
 0x9ae   :  { %2457 = vpow2.f32 %v1157_v49 }
 0x9b0   :  { %v730_v21 = vpop.permute.xlu0 %729 }
 0x9b1   :  { %v733_v23 = vmul.f32 %v730_v21, %v2669_v7  ;;  %v2409_v7 = vpack.c.bf16 %v878_v5, %v877_v35 }
 0x9b3   :  { %v2403_v28 = vpack.c.bf16 %v733_v23, %v732_v22 }
 0x9b4   :  { %v1251_v6 = vpop.permute.xlu0 %1250 }
 0x9b5   :  { %2404 = vmatpush3.bf16.msra.mxu1 %v2403_v28  ;;  %vm1252_vm14 = vcmp.eq.s32.totalorder %v1251_v6, 1 }
 0x9b6   :  { %v2454_v33 = vpop.eup %2453  ;;  %2310 = vmatprep.subr.mxu1 %v2532_v27 }
 0x9b7   :  { %v2456_v34 = vpop.eup %2455 }
 0x9b8   :  { %2293 = vmatprep.mubr.msk.f32.mxu0 %vm264_vm1, %v2456_v34  ;;  %2301 = vmatmul.mubr.msk.f32.vlgmr.msra.gmra.mrb[4].mxu1 %vm264_vm1, %v75_v29  ;;  %v2907_v50 = vpop.eup %2457 }
 0x9b9   :  { %2294 = vmatmul.mubr.msk.f32.vlgmr.msra.gmra.mrb[4].mxu0 %vm264_vm1, %v2454_v33  ;;  %2312 = vmatprep.mubr.msk.f32.mxu1 %vm2531_vm9, %v2532_v27 }
 0x9ba   :  { %2407 = vmatpush3.bf16.msra.mxu0 %v2406_v16  ;;  %2307 = vmatprep.mubr.msk.f32.mxu0 %vm2531_vm9, %v2532_v27 }
 0x9bb   :  { %2408 = vmatprep.subr.bf16.mxu0 %v2530_v59  ;;  %2311 = vmatpush3.msra.mxu1 %v881_v36 }
 0x9bc   :  { %2414 = vmatprep.subr.bf16.mxu1 %v2530_v59 }
 0x9bd   :  { %2308 = vmatmul.mubr.msk.f32.vlgmr.msra.gmra.mrb[6].mxu0 %vm264_vm1, %v75_v29 }
 0x9be   :  { %2410 = vmatpush3.bf16.msra.mxu0 %v2409_v7  ;;  %2323 = vmatprep.mubr.msk.f32.mxu0 %vm2531_vm9, %v2532_v27 }
 0x9bf   :  { %2411 = vmatprep.subr.bf16.mxu0 %v2530_v59 }
 0x9c2   :  { %2413 = vmatpush3.bf16.msra.mxu0 %v2412_v32  ;;  %v1440_v32 = vld [vmem:[%s3151_s2 + $0x6] sm:$0x3] }
 0x9c3   :  { %2338 = vmatprep.subr.mxu0 %v2532_v27 }
 0x9d9   :  { %v1166_v53 = vpop.xlane.xlu1 %1165 }
 0x9da   :  { %v1167_v54 = vsub.f32 %v2835_v63, %v1166_v53 }
 0x9dc   :  { %v1168_v9 = vmul.f32 1.442695, %v1167_v54 }
 0x9dd   :  { %v1344_v33 = vpop.permute.xlu1 %1343 }
 0x9de   :  { %vm1345_vm15 = vcmp.eq.s32.totalorder %v1344_v33, 1 }
 0xa8b   :  { %v803_v37 = vpop.f32.mrb[4].mxu1 }
 0xa8c   :  { %v2295_v38 = vpop.f32.mrb[4].mxu0  ;;  %v2302_v39 = vpop.f32.mrb[5].mxu1  ;;  %2324 = vmatmul.mubr.msk.f32.vlgmr.msra.gmra.mrb[8].mxu0 %vm81_vm0, %v803_v37  ;;  %vm1432_vm0 = vcmp.gt.f32.partialorder %v1348_v31, 0.0 }
 0xa8d   :  { %v2883_v40 = vadd.f32 %v2295_v38, %v2783_v44  ;;  %v711_v41 = vpop.f32.mrb[5].mxu0  ;;  %2340 = vmatprep.mubr.msk.f32.mxu0 %vm2531_vm9, %v2532_v27  ;;  %v1037_v44 = vld [vmem:[%s3135_s18] sm:$0xff]  ;;  %2339 = vmatpush3.msra.mxu0 %v2907_v50  ;;  %v1433_v36 = vsel %vm1432_vm0, 1, %v2529_v17 }
 0xa8e   :  { %v2888_v42 = vadd.f32 %v711_v41, %v2785_v45  ;;  %v1038_v45 = vld [vmem:[%s3135_s18 + $0x8] sm:$0xff]  ;;  %2348 = vmatprep.subr.mxu0 %v2532_v27 }
 0xa8f   :  { %1151 = vst.msk [vmem:[#allocation2 + $0x8] sm:$0xff] %vm453_vm7, %v2883_v40  ;;  %v2415_v47 = vpack.c.bf16 %v1038_v45, %v1037_v44 }
 0xa90   :  { %1150 = vst.msk [vmem:[#allocation2] sm:$0xff] %vm453_vm7, %v2888_v42  ;;  %v873_v43 = vpop.f32.mrb[6].mxu0 }
 0xa91   :  { %v2309_v46 = vpop.f32.mrb[7].mxu0  ;;  %2313 = vmatmul.mubr.msk.f32.vlgmr.msra.gmra.mrb[6].mxu1 %vm453_vm7, %v873_v43 }
 0xa92   :  { %2330 = vmatprep.mubr.msk.f32.mxu1 %vm2531_vm9, %v2532_v27  ;;  %2416 = vmatpush3.bf16.msra.mxu1 %v2415_v47 }
 0xa93   :  { %2333 = vmatprep.subr.mxu1 %v2532_v27 }
 0xa97   :  { %v1162_v3 = vld [vmem:[#allocation2] sm:$0x3]  ;;  %v1254_v29 = vld [vmem:[#allocation2 + $0x2] sm:$0x3]  ;;  %v1347_v47 = vld [vmem:[#allocation2 + $0x4] sm:$0x3] }
 0xa98   :  { %v1243_v11 = vadd.f32 %v1166_v53, %v1162_v3 }
 0xb5f   :  { %v1024_v51 = vpop.f32.mrb[8].mxu0 }
 0xb60   :  { %v2325_v52 = vpop.f32.mrb[9].mxu0 }
 0xb64   :  { %v951_v55 = vpop.f32.mrb[6].mxu1 }
 0xb65   :  { %v1025_v8 = vadd.f32 %v1024_v51, %v951_v55  ;;  %v2314_v57 = vpop.f32.mrb[7].mxu1  ;;  %v1532_v55 = vld [vmem:[%s3151_s2 + $0x8] sm:$0x3] }
 0xb66   :  { %vm1616_vm3 = vcmp.gt.f32.partialorder %v1532_v55, 0.0  ;;  %v1938_v55 = vld [vmem:[%s3154_s27 + $0x8] sm:$0xff] }
 0xb67   :  { %v1035_v58 = vadd.f32 %v2177_v56, %v1025_v8  ;;  %v1617_v56 = vsel %vm1616_vm3, 1, %v2529_v17 }
 0xb69   :  { %2459 = vtanh.f32 %v1035_v58 }
 0xb6a   :  { %2461 = vpow2.f32 %v1168_v9 }
 0xb73   :  { %v2460_v10 = vpop.eup %2459 }
 0xb74   :  { %2331 = vmatmul.mubr.msk.f32.vlgmr.msra.gmra.mrb[8].mxu1 %vm264_vm1, %v2460_v10  ;;  %v2462_v59 = vpop.eup %2461  ;;  %vm1524_vm1 = vcmp.gt.f32.partialorder %v1440_v32, 0.0  ;;  %v1923_v32 = vld [vmem:[%s3153_s6] sm:$0xff] }
 0xb75   :  { %2334 = vmatpush3.msra.mxu1 %v2907_v50  ;;  %2335 = vmatprep.mubr.msk.f32.mxu1 %vm2531_vm9, %v2532_v27  ;;  %v1525_v37 = vsel %vm1524_vm1, 1, %v2529_v17 }
 0xb76   :  { %2343 = vmatprep.subr.mxu1 %v2532_v27 }
 0xb78   :  { %2336 = vmatmul.mubr.msk.f32.vlgmr.msra.gmra.mrb[10].mxu1 %vm453_vm7, %v2462_v59 }
 0xb79   :  { %2344 = vmatpush3.msra.mxu1 %v2907_v50  ;;  %2345 = vmatprep.mubr.msk.f32.mxu1 %vm2531_vm9, %v2532_v27 }
 0xb7a   :  { %2353 = vmatprep.subr.mxu1 %v2532_v27 }
 0xc47   :  { %v2925_v62 = vpop.f32.mrb[8].mxu1 }
 0xc48   :  { %v2332_v0 = vpop.f32.mrb[9].mxu1 }
 0xc4b   :  { %v1239_v1 = vpop.f32.mrb[10].mxu1 }
 0xc4c   :  { %2463 = vlog2.f32 %v1239_v1  ;;  %v2337_v2 = vpop.f32.mrb[11].mxu1  ;;  %v1439_v1 = vld [vmem:[#allocation2 + $0x6] sm:$0x3] }
 0xc56   :  { %v2464_v4 = vpop.eup %2463 }
 0xc57   :  { %v1245_v12 = vmul.f32 0.6931472, %v2464_v4 }
 0xc59   :  { %v1246_v13 = vadd.f32 %v1245_v12, %v1243_v11 }
 0xc5b   :  { %v1253_v14 = vsel %vm1252_vm14, %v1246_v13, %v2835_v63 }
 0xc5c   :  { %v1257_v15 = vsel %vm1256_vm13, %v1253_v14, -inf }
 0xc5d   :  { %1258 = vmax.xlane.f32.xlu0 %v1257_v15 }
 0xcea   :  { %v1259_v16 = vpop.xlane.xlu0 %1258 }
 0xceb   :  { %v1260_v20 = vsub.f32 %v1253_v14, %v1259_v16  ;;  %v1336_v34 = vadd.f32 %v1259_v16, %v1254_v29 }
 0xced   :  { %v1261_v21 = vmul.f32 1.442695, %v1260_v20 }
 0xcef   :  { %2465 = vpow2.f32 %v1261_v21 }
 0xcf9   :  { %v2466_v22 = vpop.eup %2465 }
 0xcfa   :  { %2341 = vmatmul.mubr.msk.f32.vlgmr.msra.gmra.mrb[10].mxu0 %vm453_vm7, %v2466_v22 }
 0xcfb   :  { %2349 = vmatpush3.msra.mxu0 %v2907_v50  ;;  %2350 = vmatprep.mubr.msk.f32.mxu0 %vm2531_vm9, %v2532_v27 }
 0xcfc   :  { %2358 = vmatprep.subr.mxu0 %v2532_v27 }
 0xdcd   :  { %v1332_v23 = vpop.f32.mrb[10].mxu0 }
 0xdce   :  { %2467 = vlog2.f32 %v1332_v23  ;;  %v2342_v63 = vpop.f32.mrb[11].mxu0  ;;  %v1531_v23 = vld [vmem:[#allocation2 + $0x8] sm:$0x3] }
 0xdd8   :  { %v2468_v28 = vpop.eup %2467 }
 0xdd9   :  { %v1338_v35 = vmul.f32 0.6931472, %v2468_v28 }
 0xddb   :  { %v1339_v5 = vadd.f32 %v1338_v35, %v1336_v34 }
 0xddd   :  { %v1346_v7 = vsel %vm1345_vm15, %v1339_v5, %v1253_v14  ;;  %v1624_v5 = vld [vmem:[%s3151_s2 + $0xa] sm:$0x3] }
 0xdde   :  { %v1349_v30 = vsel %vm1256_vm13, %v1346_v7, -inf  ;;  %vm1708_vm8 = vcmp.gt.f32.partialorder %v1624_v5, 0.0 }
 0xddf   :  { %1350 = vmax.xlane.f32.xlu0 %v1349_v30  ;;  %v1709_v30 = vsel %vm1708_vm8, 1, %v2529_v17  ;;  %vm2128_vm8 = vcmask 57344  }
 0xdf5   :  { %1435 = vperm.xlu0 %2424, %v1433_v36   ;;  %v1924_v36 = vld [vmem:[%s3153_s6 + $0x8] sm:$0xff] }
 0xdf9   :  { %1527 = vperm.xlu0 %2424, %v1525_v37  }
 0xe6c   :  { %v1351_v38 = vpop.xlane.xlu0 %1350 }
 0xe6d   :  { %v1352_v39 = vsub.f32 %v1346_v7, %v1351_v38  ;;  %v1428_v48 = vadd.f32 %v1351_v38, %v1347_v47 }
 0xe6f   :  { %v1353_v41 = vmul.f32 1.442695, %v1352_v39 }
 0xe71   :  { %2469 = vpow2.f32 %v1353_v41 }
 0xe74   :  { %v1436_v49 = vpop.permute.xlu0 %1435 }
 0xe75   :  { %vm1437_vm2 = vcmp.eq.s32.totalorder %v1436_v49, 1 }
 0xe78   :  { %v1528_v2 = vpop.permute.xlu0 %1527 }
 0xe79   :  { %vm1529_vm4 = vcmp.eq.s32.totalorder %v1528_v2, 1 }
 0xe7b   :  { %v2470_v43 = vpop.eup %2469 }
 0xe7c   :  { %2346 = vmatmul.mubr.msk.f32.vlgmr.msra.gmra.mrb[12].mxu1 %vm453_vm7, %v2470_v43 }
 0xe7d   :  { %2354 = vmatpush3.msra.mxu1 %v2907_v50  ;;  %2355 = vmatprep.mubr.msk.f32.mxu1 %vm2531_vm9, %v2532_v27 }
 0xe7e   :  { %2363 = vmatprep.subr.mxu1 %v2532_v27 }
 0xf4f   :  { %v1424_v46 = vpop.f32.mrb[12].mxu1 }
 0xf50   :  { %2471 = vlog2.f32 %v1424_v46  ;;  %v2347_v44 = vpop.f32.mrb[13].mxu1 }
 0xf5a   :  { %v2472_v45 = vpop.eup %2471 }
 0xf5b   :  { %v1430_v51 = vmul.f32 0.6931472, %v2472_v45  ;;  %v1623_v45 = vld [vmem:[#allocation2 + $0xa] sm:$0x3] }
 0xf5d   :  { %v1431_v52 = vadd.f32 %v1430_v51, %v1428_v48 }
 0xf5f   :  { %v1438_v53 = vsel %vm1437_vm2, %v1431_v52, %v1346_v7  ;;  %v1716_v7 = vld [vmem:[%s3151_s2 + $0xc] sm:$0x3]  ;;  %vm1112_vm2 = vcmask 9216  }
 0xf60   :  { %v1441_v54 = vsel %vm1256_vm13, %v1438_v53, -inf  ;;  %vm1800_vm10 = vcmp.gt.f32.partialorder %v1716_v7, 0.0 }
 0xf61   :  { %1442 = vmax.xlane.f32.xlu1 %v1441_v54  ;;  %v1801_v31 = vsel %vm1800_vm10, 1, %v2529_v17  ;;  %v1808_v54 = vld [vmem:[%s3151_s2 + $0xe] sm:$0x3] }
 0xf72   :  { %1619 = vperm.xlu1 %2423, %v1617_v56  }
 0xfee   :  { %v1443_v8 = vpop.xlane.xlu1 %1442 }
 0xfef   :  { %v1444_v57 = vsub.f32 %v1438_v53, %v1443_v8  ;;  %v1520_v3 = vadd.f32 %v1443_v8, %v1439_v1 }
 0xff1   :  { %v1445_v9 = vmul.f32 1.442695, %v1444_v57 }
 0xff2   :  { %v1620_v63 = vpop.permute.xlu1 %1619 }
 0xff3   :  { %2473 = vpow2.f32 %v1445_v9  ;;  %vm1621_vm5 = vcmp.eq.s32.totalorder %v1620_v63, 1 }
 0xffd   :  { %v2474_v58 = vpop.eup %2473 }
 0xffe   :  { %2351 = vmatmul.mubr.msk.f32.vlgmr.msra.gmra.mrb[12].mxu0 %vm453_vm7, %v2474_v58 }
 0xfff   :  { %2359 = vmatpush3.msra.mxu0 %v2907_v50  ;;  %2360 = vmatprep.mubr.msk.f32.mxu0 %vm2531_vm9, %v2532_v27 }
0x1000   :  { %2368 = vmatprep.subr.mxu0 %v2532_v27 }
0x10d1   :  { %v1516_v10 = vpop.f32.mrb[12].mxu0 }
0x10d2   :  { %2475 = vlog2.f32 %v1516_v10  ;;  %v2352_v59 = vpop.f32.mrb[13].mxu0 }
0x10dc   :  { %v2476_v0 = vpop.eup %2475 }
0x10dd   :  { %v1522_v4 = vmul.f32 0.6931472, %v2476_v0 }
0x10df   :  { %v1523_v6 = vadd.f32 %v1522_v4, %v1520_v3 }
0x10e1   :  { %v1530_v11 = vsel %vm1529_vm4, %v1523_v6, %v1438_v53 }
0x10e2   :  { %v1533_v12 = vsel %vm1256_vm13, %v1530_v11, -inf }
0x10e3   :  { %1534 = vmax.xlane.f32.xlu0 %v1533_v12 }
0x1170   :  { %v1535_v13 = vpop.xlane.xlu0 %1534 }
0x1171   :  { %v1536_v14 = vsub.f32 %v1530_v11, %v1535_v13  ;;  %v1612_v28 = vadd.f32 %v1535_v13, %v1531_v23 }
0x1173   :  { %v1537_v15 = vmul.f32 1.442695, %v1536_v14 }
0x1175   :  { %2477 = vpow2.f32 %v1537_v15 }
0x117f   :  { %v2478_v16 = vpop.eup %2477 }
0x1180   :  { %2356 = vmatmul.mubr.msk.f32.vlgmr.msra.gmra.mrb[14].mxu1 %vm453_vm7, %v2478_v16 }
0x1181   :  { %2364 = vmatpush3.msra.mxu1 %v2907_v50  ;;  %2365 = vmatprep.mubr.msk.f32.mxu1 %vm2531_vm9, %v2532_v27 }
0x1253   :  { %v1608_v20 = vpop.f32.mrb[14].mxu1 }
0x1254   :  { %2479 = vlog2.f32 %v1608_v20  ;;  %v2357_v21 = vpop.f32.mrb[15].mxu1 }
0x125e   :  { %v2480_v22 = vpop.eup %2479 }
0x125f   :  { %v1614_v29 = vmul.f32 0.6931472, %v2480_v22 }
0x1261   :  { %v1615_v33 = vadd.f32 %v1614_v29, %v1612_v28  ;;  %v1715_v28 = vld [vmem:[#allocation2 + $0xc] sm:$0x3] }
0x1263   :  { %v1622_v34 = vsel %vm1621_vm5, %v1615_v33, %v1530_v11 }
0x1264   :  { %v1625_v35 = vsel %vm1256_vm13, %v1622_v34, -inf }
0x1265   :  { %1626 = vmax.xlane.f32.xlu0 %v1625_v35 }
0x127b   :  { %1711 = vperm.xlu0 %2424, %v1709_v30  }
0x127f   :  { %1803 = vperm.xlu0 %2424, %v1801_v31  }
0x1283   :  { %1926 = vperm.xlu0 %2424, %v1923_v32  }
0x1287   :  { %1929 = vperm.xlu0 %2424, %v1924_v36  }
0x12f2   :  { %v1627_v37 = vpop.xlane.xlu0 %1626 }
0x12f3   :  { %v1628_v38 = vsub.f32 %v1622_v34, %v1627_v37  ;;  %v1704_v47 = vadd.f32 %v1627_v37, %v1623_v45  ;;  %v1113_v37 = vsel %vm1112_vm2, %v2925_v62, -inf  ;;  %v1900_v45 = vshrl.u32 %v1127_v60, 7 }
0x12f5   :  { %v1629_v39 = vmul.f32 1.442695, %v1628_v38 }
0x12f7   :  { %2481 = vpow2.f32 %v1629_v39 }
0x12fa   :  { %v1712_v48 = vpop.permute.xlu0 %1711 }
0x12fb   :  { %vm1713_vm11 = vcmp.eq.s32.totalorder %v1712_v48, 1  ;;  %v3039_v48 = vld [vmem:[%s3152_s28] sm:$0xff] }
0x12fe   :  { %v1804_v8 = vpop.permute.xlu0 %1803 }
0x12ff   :  { %vm1805_vm0 = vcmp.eq.s32.totalorder %v1804_v8, 1 }
0x1301   :  { %v2482_v41 = vpop.eup %2481 }
0x1302   :  { %2361 = vmatmul.mubr.msk.f32.vlgmr.msra.gmra.mrb[14].mxu0 %vm453_vm7, %v2482_v41  ;;  %v1927_v58 = vpop.permute.xlu0 %1926 }
0x1303   :  { %2369 = vmatpush3.msra.mxu0 %v2907_v50  ;;  %2370 = vmatprep.mubr.msk.f32.mxu0 %vm2531_vm9, %v2532_v27  ;;  %v1937_v50 = vld [vmem:[%s3154_s27] sm:$0xff]  ;;  %vm1892_vm9 = vcmp.gt.f32.partialorder %v1808_v54, 0.0  ;;  %vm1931_vm12 = vcmp.eq.s32.totalorder %v1927_v58, %v2826_v61 }
0x1304   :  { %v1893_v56 = vsel %vm1892_vm9, 1, %v2529_v17  ;;  %v3000_v0 = vsel %vm1931_vm12, 1.0, %v2532_v27 }
0x1305   :  { %v2040_v39 = vmul.f32 %v3000_v0, %v2888_v42 }
0x1306   :  { %v1930_v10 = vpop.permute.xlu0 %1929 }
0x1307   :  { %vm1932_vm14 = vcmp.eq.s32.totalorder %v1930_v10, %v2826_v61 }
0x1308   :  { %v3007_v17 = vsel %vm1932_vm14, 1.0, %v2532_v27 }
0x13d5   :  { %v1700_v43 = vpop.f32.mrb[14].mxu0 }
0x13d6   :  { %2483 = vlog2.f32 %v1700_v43  ;;  %v2362_v46 = vpop.f32.mrb[15].mxu0  ;;  %v2042_v43 = vsel %vm453_vm7, %v2040_v39, 0.0 }
0x13d7   :  { %v2041_v46 = vmul.f32 %v3007_v17, %v2883_v40  ;;  %v3046_v40 = vld [vmem:[%s3136_s19 + $0x1] sm:$0x1] }
0x13e0   :  { %v2484_v44 = vpop.eup %2483 }
0x13e1   :  { %v1706_v49 = vmul.f32 0.6931472, %v2484_v44 }
0x13e3   :  { %v1707_v51 = vadd.f32 %v1706_v49, %v1704_v47  ;;  %v2045_v47 = vsel %vm453_vm7, %v2041_v46, 0.0  ;;  %v1901_v49 = vsub.s32 0, %v1900_v45 }
0x13e5   :  { %v1714_v52 = vsel %vm1713_vm11, %v1707_v51, %v1622_v34  ;;  %v3052_v51 = vld [vmem:[%s3152_s28 + $0x8] sm:$0xff] }
0x13e6   :  { %v1717_v53 = vsel %vm1256_vm13, %v1714_v52, -inf }
0x13e7   :  { %1718 = vmax.xlane.f32.xlu1 %v1717_v53  ;;  %v3057_v53 = vrot.slane %v3046_v40, %v1901_v49 }
0x13e9   :  { %v2048_v54 = vmul.f32 %v3000_v0, %v3057_v53 }
0x13f8   :  { %2058 = vperm.xlu1 %2423, %v2693_v18   ;;  %v76_v18 = vld [vmem:[%s3136_s19] sm:$0xff] }
0x13f9   :  { %2373 = vmatprep.subr.mxu1 %v76_v18 }
0x13fc   :  { %2063 = vperm.xlu1 %2423, %v2699_v19  }
0x1400   :  { %1940 = vperm.xlu1 %2423, %v1937_v50  }
0x1404   :  { %1943 = vperm.xlu1 %2423, %v1938_v55   ;;  %v2050_v55 = vsel %vm453_vm7, %v2048_v54, 0.0 }
0x1408   :  { %1895 = vperm.xlu1 %2423, %v1893_v56   ;;  %v2049_v56 = vmul.f32 %v3007_v17, %v3057_v53 }
0x1474   :  { %v1719_v19 = vpop.xlane.xlu1 %1718 }
0x1475   :  { %v1720_v57 = vsub.f32 %v1714_v52, %v1719_v19  ;;  %v1796_v29 = vadd.f32 %v1719_v19, %v1715_v28 }
0x1477   :  { %v1721_v9 = vmul.f32 1.442695, %v1720_v57 }
0x1478   :  { %v2059_v1 = vpop.permute.xlu1 %2058 }
0x1479   :  { %2485 = vpow2.f32 %v1721_v9  ;;  %v2066_v11 = vmul.f32 %v2059_v1, %v2709_v24 }
0x147b   :  { %v2068_v15 = vsel %vm289_vm6, %v2066_v11, 0.0 }
0x147c   :  { %v2064_v2 = vpop.permute.xlu1 %2063 }
0x147d   :  { %v2067_v4 = vmul.f32 %v2064_v2, %v2714_v25 }
0x147f   :  { %v2069_v14 = vsel %vm289_vm6, %v2067_v4, 0.0 }
0x1480   :  { %v1941_v3 = vpop.permute.xlu1 %1940  ;;  %v2070_v21 = vadd.f32 %v2069_v14, %v2068_v15 }
0x1481   :  { %vm1945_vm1 = vcmp.eq.s32.totalorder %v1941_v3, %v2826_v61  ;;  %v2085_v3 = vld [vmem:[%s3124_s7] sm:$0xff] }
0x1482   :  { %v2071_v63 = vrot.slane %v2070_v21, 4  ;;  %v2191_v31 = vsel %vm1945_vm1, 1.0, %v2532_v27 }
0x1483   :  { %v2486_v59 = vpop.eup %2485 }
0x1484   :  { %2366 = vmatmul.mubr.msk.f32.vlgmr.msra.gmra.mrb[16].mxu1 %vm453_vm7, %v2486_v59  ;;  %v1944_v6 = vpop.permute.xlu1 %1943  ;;  %v2072_v34 = vadd.f32 %v2071_v63, %v2070_v21 }
0x1485   :  { %2375 = vmatprep.mubr.msk.f32.mxu1 %vm453_vm7, %v3000_v0  ;;  %2374 = vmatpush3.msra.mxu1 %v76_v18  ;;  %vm1946_vm15 = vcmp.eq.s32.totalorder %v1944_v6, %v2826_v61  ;;  %v2053_v18 = vsel %vm453_vm7, %v2049_v56, 0.0 }
0x1486   :  { %v2192_v16 = vsel %vm1946_vm15, 1.0, %v2532_v27  ;;  %v2073_v7 = vrot.slane %v2072_v34, 2 }
0x1488   :  { %2376 = vmatmul.mubr.msk.f32.vlgmr.msra.gmra.mrb[18].mxu1 %vm453_vm7, %v3007_v17  ;;  %v2074_v32 = vadd.f32 %v2073_v7, %v2072_v34  ;;  %v1896_v14 = vpop.permute.xlu1 %1895  ;;  %v2504_v34 = vld [vmem:[%s3151_s2 + $0x8] sm:$0xff] }
0x1489   :  { %vm1897_vm5 = vcmp.eq.s32.totalorder %v1896_v14, 1 }
0x148a   :  { %v2075_v41 = vrot.slane %v2074_v32, 1 }
0x148c   :  { %v3032_v44 = vadd.f32 %v2075_v41, %v2074_v32 }
0x148e   :  { %v2077_v42 = vmul.f32 %v3039_v48, %v3032_v44  ;;  %vm2132_vm10 = vcmp.eq.f32.partialorder %v3032_v44, 0.0 }
0x1490   :  { %v2079_v60 = vsel %vm289_vm6, %v2077_v42, 0.0 }
0x1557   :  { %v1792_v12 = vpop.f32.mrb[16].mxu1 }
0x1558   :  { %2487 = vlog2.f32 %v1792_v12  ;;  %v2367_v13 = vpop.f32.mrb[17].mxu1  ;;  %v2087_v12 = vadd.f32 1.0, %v2085_v3 }
0x1559   :  { %v2086_v13 = vld [vmem:[%s3124_s7 + $0x8] sm:$0xff] }
0x155b   :  { %v2377_v20 = vpop.f32.mrb[18].mxu1 }
0x155c   :  { %v2033_v22 = vmul.f32 %v2377_v20, %v2192_v16  ;;  %v2023_v23 = vpop.f32.mrb[19].mxu1  ;;  %v2088_v16 = vadd.f32 1.0, %v2086_v13 }
0x155d   :  { %v2032_v36 = vmul.f32 %v2191_v31, %v2023_v23  ;;  %v2503_v23 = vld [vmem:[%s3151_s2] sm:$0xff]  ;;  %s2534_s2 = smov [#allocation3]  }
0x155e   :  { %v2037_v25 = vsel %vm453_vm7, %v2033_v22, 0.0  ;;  %v1126_v31 = vld [vmem:[%s3155_s10] sm:$0x3]  ;;  %s2152_s6 = sshll.u32 %s2534_s2, 4  ;;  %s2153_s6 = int_to_ptr.vmem [resolvable:$true] %s2152_s6 }
0x155f   :  { %2038 = vadd.xlane.f32.xlu1 %v2037_v25  ;;  %v2034_v38 = vsel %vm453_vm7, %v2032_v36, 0.0  ;;  %s2505_s11 = scalar_lea.vmem %s2153_s6, 16  ;;  %s2509_s24 = scalar_lea.vmem %s2153_s6, 32 }
0x1560   :  { %p2506_p0 = scmp.ne.s32.totalorder %s2153_s6, %s2505_s11  ;;  %p2510_p1 = scmp.lt.s32.totalorder %s2153_s6, %s2153_s6 }
0x1561   :  { %p2511_p2 = scmp.lt.s32.totalorder %s2509_s24, %s2505_s11 }
0x1562   :  { %v2488_v24 = vpop.eup %2487 }
0x1563   :  { %v1798_v33 = vmul.f32 0.6931472, %v2488_v24  ;;  %p2512_p3 = por %p2511_p2, %p2510_p1 }
0x1565   :  { %v1799_v35 = vadd.f32 %v1798_v33, %v1796_v29  ;;  %p2513_p4 = pnand %p2512_p3, %p2506_p0 }
0x1567   :  { %v3018_v5 = vsel %vm1805_vm0, %v1799_v35, %v1714_v52  ;;  %v2078_v52 = vmul.f32 %v3052_v51, %v3032_v44 }
0x1568   :  { %v1809_v30 = vsel %vm1256_vm13, %v3018_v5, -inf }
0x1569   :  { %1810 = vmax.xlane.f32.xlu0 %v1809_v30  ;;  %v2082_v50 = vsel %vm289_vm6, %v2078_v52, 0.0  ;;  %v1807_v52 = vld [vmem:[#allocation2 + $0xe] sm:$0x3] }
0x156d   :  { %1114 = vmax.xlane.f32.xlu0 %v1113_v37 }
0x1571   :  { %2035 = vadd.xlane.f32.xlu0 %v2034_v38 }
0x1575   :  { %2043 = vadd.xlane.f32.xlu0 %v2042_v43 }
0x1579   :  { %2046 = vadd.xlane.f32.xlu0 %v2045_v47 }
0x157d   :  { %2080 = vadd.xlane.f32.xlu0 %v2079_v60 }
0x1581   :  { %2083 = vadd.xlane.f32.xlu0 %v2082_v50 }
0x1585   :  { %2051 = vadd.xlane.f32.xlu0 %v2050_v55 }
0x1589   :  { %2054 = vadd.xlane.f32.xlu0 %v2053_v18 }
0x15ec   :  { %v2039_v20 = vpop.xlane.xlu1 %2038 }
0x15f6   :  { %v1811_v19 = vpop.xlane.xlu0 %1810 }
0x15f7   :  { %v1812_v8 = vsub.f32 %v3018_v5, %v1811_v19  ;;  %v1888_v50 = vadd.f32 %v1811_v19, %v1807_v52 }
0x15f9   :  { %v1813_v57 = vmul.f32 1.442695, %v1812_v8 }
0x15fa   :  { %v1115_v9 = vpop.xlane.xlu0 %1114 }
0x15fb   :  { %2489 = vpow2.f32 %v1813_v57  ;;  %v1116_v58 = vsub.f32 %v2925_v62, %v1115_v9 }
0x15fd   :  { %v1117_v10 = vmul.f32 1.442695, %v1116_v58 }
0x15fe   :  { %v2036_v59 = vpop.xlane.xlu0 %2035 }
0x15ff   :  { %2491 = vpow2.f32 %v1117_v10 }
0x1602   :  { %v2044_v0 = vpop.xlane.xlu0 %2043 }
0x1603   :  { %v2095_v1 = vadd.f32 %v2044_v0, %v2036_v59 }
0x1605   :  { %v2490_v2 = vpop.eup %2489  ;;  %v2097_v25 = vmul.f32 %v2503_v23, %v2095_v1 }
0x1606   :  { %2371 = vmatmul.mubr.msk.f32.vlgmr.msra.gmra.mrb[16].mxu0 %vm453_vm7, %v2490_v2  ;;  %v2047_v17 = vpop.xlane.xlu0 %2046 }
0x1607   :  { %v2096_v63 = vadd.f32 %v2047_v17, %v2039_v20 }
0x1609   :  { %v2492_v4 = vpop.eup %2491  ;;  %v2098_v35 = vmul.f32 %v2504_v34, %v2096_v63 }
0x160a   :  { %v2081_v6 = vpop.xlane.xlu0 %2080  ;;  %v1119_v11 = vsel %vm1112_vm2, %v2492_v4, 0.0  ;;  %v2133_v4 = vsel %vm2132_vm10, 1.0, %v2532_v27 }
0x160b   :  { %1120 = vadd.xlane.f32.xlu0 %v1119_v11  ;;  %vm2089_vm3 = vcmp.eq.f32.partialorder %v2087_v12, %v2081_v6  ;;  %v2134_v11 = vsel %vm289_vm6, %v2133_v4, 0.0 }
0x160c   :  { %v2195_v21 = vsel %vm2089_vm3, 1.0, %v2532_v27 }
0x160e   :  { %v2084_v15 = vpop.xlane.xlu0 %2083 }
0x160f   :  { %vm2090_vm7 = vcmp.eq.f32.partialorder %v2088_v16, %v2084_v15 }
0x1610   :  { %v2196_v29 = vsel %vm2090_vm7, 1.0, %v2532_v27 }
0x1612   :  { %v2052_v22 = vpop.xlane.xlu0 %2051 }
0x1613   :  { %v2099_v24 = vmul.f32 %v2195_v21, %v2052_v22 }
0x1615   :  { %v2101_v28 = vadd.f32 %v2099_v24, %v2097_v25 }
0x1616   :  { %v2055_v33 = vpop.xlane.xlu0 %2054 }
0x1617   :  { %v2100_v7 = vmul.f32 %v2196_v29, %v2055_v33 }
0x1619   :  { %v2102_v30 = vadd.f32 %v2100_v7, %v2098_v35 }
0x161b   :  { %2110 = vperm.xlu1 %2423, %v2102_v30  }
0x161f   :  { %1130 = vperm.xlu1 %2423, %v1126_v31  }
0x1698   :  { %v1121_v32 = vpop.xlane.xlu0 %1120 }
0x1699   :  { %2493 = vlog2.f32 %v1121_v32 }
0x169a   :  { %v2111_v36 = vpop.permute.xlu1 %2110 }
0x169e   :  { %v1131_v38 = vpop.permute.xlu1 %1130 }
0x169f   :  { %vm1132_vm4 = vcmp.eq.s32.totalorder %v1131_v38, %v2826_v61 }
0x16a0   :  { %v2179_v46 = vsel %vm1132_vm4, 1.0, %v2532_v27 }
0x16a3   :  { %v2494_v37 = vpop.eup %2493 }
0x16a4   :  { %v1123_v39 = vmul.f32 0.6931472, %v2494_v37 }
0x16a6   :  { %v1124_v41 = vadd.f32 %v1123_v39, %v1115_v9  ;;  %v2114_v9 = vmul.f32 %v3052_v51, %v2111_v36 }
0x16a8   :  { %v1125_v43 = vsub.f32 %v2925_v62, %v1124_v41  ;;  %v2116_v10 = vsel %vm289_vm6, %v2114_v9, 0.0 }
0x16aa   :  { %v1135_v45 = vmul.f32 %v2179_v46, %v1125_v43 }
0x16ac   :  { %v1136_v47 = vsel %vm1112_vm2, %v1135_v45, 0.0 }
0x16ad   :  { %1137 = vadd.xlane.f32.xlu1 %v1136_v47 }
0x16d9   :  { %v1884_v42 = vpop.f32.mrb[16].mxu0 }
0x16da   :  { %2495 = vlog2.f32 %v1884_v42  ;;  %v2372_v49 = vpop.f32.mrb[17].mxu0 }
0x16e4   :  { %v2496_v60 = vpop.eup %2495 }
0x16e5   :  { %v1890_v54 = vmul.f32 0.6931472, %v2496_v60 }
0x16e7   :  { %v1891_v55 = vadd.f32 %v1890_v54, %v1888_v50 }
0x16e9   :  { %v1898_v56 = vsel %vm1897_vm5, %v1891_v55, %v3018_v5 }
0x16ea   :  { %v1903_v61 = vadd.f32 %v3057_v53, %v1898_v56  ;;  %v2127_v53 = vmul.f32 %v2832_v26, %v3046_v40 }
0x16ec   :  { %v1904_v62 = vsel %vm1256_vm13, %v1903_v61, -inf  ;;  %v2129_v3 = vsel %vm2128_vm8, %v2127_v53, 0.0 }
0x16ed   :  { %1905 = vmax.xlane.f32.xlu0 %v1904_v62 }
0x1703   :  { %2105 = vperm.xlu0 %2424, %v2101_v28  }
0x173a   :  { %v1138_v40 = vpop.xlane.xlu1 %1137 }
0x173b   :  { %v1139_v13 = vsub.f32 0.0, %v1138_v40 }
0x177a   :  { %v1906_v18 = vpop.xlane.xlu0 %1905 }
0x177b   :  { %v1907_v8 = vsub.f32 %v1903_v61, %v1906_v18 }
0x177d   :  { %v1908_v57 = vmul.f32 1.442695, %v1907_v8 }
0x177f   :  { %2497 = vpow2.f32 %v1908_v57 }
0x1782   :  { %v2106_v58 = vpop.permute.xlu0 %2105 }
0x1783   :  { %v2113_v19 = vmul.f32 %v3039_v48, %v2106_v58 }
0x1785   :  { %v2115_v59 = vsel %vm289_vm6, %v2113_v19, 0.0 }
0x1786   :  { %v2117_v5 = vadd.f32 %v2116_v10, %v2115_v59 }
0x1788   :  { %v2118_v0 = vrot.slane %v2117_v5, 4 }
0x1789   :  { %v2498_v1 = vpop.eup %2497 }
0x178a   :  { %v2119_v2 = vadd.f32 %v2118_v0, %v2117_v5  ;;  %v1910_v17 = vsel %vm1256_vm13, %v2498_v1, 0.0  ;;  %vm1140_vm13 = vcmask 1041408  }
0x178b   :  { %1911 = vadd.xlane.f32.xlu0 %v1910_v17  ;;  %v1141_v15 = vsel %vm1140_vm13, %v1139_v13, 0.0 }
0x178c   :  { %v2120_v51 = vrot.slane %v2119_v2, 2  ;;  %v1142_v44 = vrot.slane %v1141_v15, 4 }
0x178e   :  { %v2121_v48 = vadd.f32 %v2120_v51, %v2119_v2  ;;  %v1143_v16 = vadd.f32 %v1142_v44, %v1141_v15 }
0x178f   :  { %2130 = vadd.xlane.f32.xlu0 %v2129_v3 }
0x1790   :  { %v2122_v6 = vrot.slane %v2121_v48, 1  ;;  %v1144_v22 = vrot.slane %v1143_v16, 2 }
0x1792   :  { %v2123_v12 = vadd.f32 %v2122_v6, %v2121_v48  ;;  %v1145_v63 = vadd.f32 %v1144_v22, %v1143_v16 }
0x1793   :  { %2135 = vadd.xlane.f32.xlu0 %v2134_v11 }
0x1794   :  { %v2124_v26 = vsel %vm289_vm6, %v2123_v12, 0.0  ;;  %v1146_v33 = vrot.slane %v1145_v63, 1  ;;  %vm2144_vm6 = vcmask 0  }
0x1795   :  { %2125 = vadd.xlane.f32.xlu1 %v2124_v26 }
0x1796   :  { %v1147_v32 = vadd.f32 %v1146_v33, %v1145_v63 }
0x1798   :  { %v1149_v39 = vmul.f32 0.5, %v1147_v32 }
0x179a   :  { %v2141_v46 = vmul.f32 0.2, %v1149_v39 }
0x1818   :  { %v1912_v14 = vpop.xlane.xlu0 %1911 }
0x1819   :  { %2499 = vlog2.f32 %v1912_v14 }
0x181c   :  { %v2131_v23 = vpop.xlane.xlu0 %2130 }
0x1820   :  { %v2136_v29 = vpop.xlane.xlu0 %2135 }
0x1821   :  { %v2137_v35 = vmul.f32 %v2136_v29, %v2131_v23 }
0x1822   :  { %v2126_v30 = vpop.xlane.xlu1 %2125 }
0x1823   :  { %v2500_v20 = vpop.eup %2499  ;;  %v2138_v37 = vadd.f32 %v2137_v35, %v2126_v30 }
0x1824   :  { %v1914_v21 = vmul.f32 0.6931472, %v2500_v20 }
0x1826   :  { %v1915_v27 = vadd.f32 %v1914_v21, %v1906_v18 }
0x1828   :  { %v1916_v25 = vsel %vm1140_vm13, %v1915_v27, 0.0 }
0x1829   :  { %v1917_v24 = vrot.slane %v1916_v25, 4 }
0x182b   :  { %v1918_v28 = vadd.f32 %v1917_v24, %v1916_v25 }
0x182d   :  { %v1919_v34 = vrot.slane %v1918_v28, 2 }
0x182f   :  { %v1920_v7 = vadd.f32 %v1919_v34, %v1918_v28 }
0x1831   :  { %v1921_v31 = vrot.slane %v1920_v7, 1 }
0x1833   :  { %v1922_v36 = vadd.f32 %v1921_v31, %v1920_v7 }
0x1835   :  { %v2139_v38 = vsub.f32 %v1922_v36, %v2138_v37 }
0x1837   :  { %v2140_v41 = vmul.f32 0.5, %v2139_v38 }
0x1839   :  { %v2142_v43 = vmul.f32 0.8, %v2140_v41 }
0x183b   :  { %v2143_v45 = vadd.f32 %v2142_v43, %v2141_v46 }
0x183d   :  { %2145 = vst.msk [vmem:[#allocation3] sm:$0x1] %vm2144_vm6, %v2143_v45 }
0x183e   :  { %2516 = shalt.err (!%p2513_p4)
}
0x183f   :  { %s2517_s27 = scalar_lea.hbm %s3138_s21, 16 }
0x1840   :  { %p2518_p5 = scmp.ne.s32.totalorder %s3138_s21, %s2517_s27  ;;  %p2521_p6 = scmp.lt.u32.totalorder %s2517_s27, %s3138_s21 }
0x1842   :  { %p2523_p7 = pnand %p2521_p6, %p2518_p5 }
0x1844   :  { %2526 = shalt.err (!%p2523_p7)
}
0x1845   :  { %2155 = dma.vmem_to_hbm [thread:$0]  %s2153_s6, 16, %s3138_s21, [#allocation4]  }
0x1846   :  { %2527 = dma.done.wait [#allocation4], 16  }
0x1847   :  { %2528 = vsyncadd [#allocation4], 4294967280 }
0x1848   :  { %2159 = vsyncpa [#allocation4], 1 }

</bundles_post_ra>
